<compile_context>
chip_gen: v7x
topology: tpu7x:2x2x1
jax: 0.10.0
libtpu: 0.0.40
codegen_flags: <defaults>
</compile_context>

<pallas_src>
import math

import jax
import jax.numpy as jnp
from jax import lax
from jax.experimental import pallas as pl
from jax.experimental.pallas import tpu as pltpu


# ----------------------------------------------------------------------------
# Model dimensions (toy config consistent with the module)
# ----------------------------------------------------------------------------
D_MODEL, N_HEADS, D_FF, N_LAYERS = 32, 4, 64, 2
CLF_HIDDEN, N_CLASSES = 16, 10
BATCH, SEQ = 2, 8
HEAD_DIM = D_MODEL // N_HEADS
BS = BATCH * SEQ


# ----------------------------------------------------------------------------
# Fused forward kernel
# ----------------------------------------------------------------------------

def _layernorm(h, g, b, eps=1e-5):
    mu = jnp.mean(h, axis=-1, keepdims=True)
    var = jnp.mean((h - mu) ** 2, axis=-1, keepdims=True)
    return (h - mu) * lax.rsqrt(var + eps) * g + b


def _fused_forward_kernel(
    x_ref, wqkv_ref, bqkv_ref, wo_ref, bo_ref,
    w1_ref, b1_ref, w2_ref, b2_ref,
    ln1g_ref, ln1b_ref, ln2g_ref, ln2b_ref,
    pool_ref, cw1_ref, cb1_ref, cw2_ref, cb2_ref, y_ref,
    loss_ref,
):
    h = x_ref[...].astype(jnp.float32)                          # (B*S, D)

    for l in range(N_LAYERS):                                   # static unroll (2 layers)
        # ---- fused QKV projection: one lane-dense matmul D -> 3D, all in vregs ----
        qkv = (jnp.dot(h, wqkv_ref[l], preferred_element_type=jnp.float32)
               + bqkv_ref[l:l + 1, :])                          # (B*S, 3D)

        # ---- gather per-(batch, head) tiles into a (B*H, S, Dh) batch so that the
        #      scores / P@V products are TWO batched MXU einsums and the softmax
        #      reductions are ONE batched XLU pass (instead of 16 tiny ones) ----
        def head_slices(base):
            return [qkv[b * SEQ:(b + 1) * SEQ,
                        base + hd * HEAD_DIM: base + (hd + 1) * HEAD_DIM]
                    for b in range(BATCH) for hd in range(N_HEADS)]
        q = jnp.stack(head_slices(0))                           # (B*H, S, Dh)
        k = jnp.stack(head_slices(D_MODEL))                     # (B*H, S, Dh)
        v = jnp.stack(head_slices(2 * D_MODEL))                 # (B*H, S, Dh)

        # scores (1/sqrt(Dh) already folded into Wq/bq on the host)
        s = jnp.einsum('bqd,bkd->bqk', q, k,
                       preferred_element_type=jnp.float32)      # (B*H, S, S)
        m = jnp.max(s, axis=-1, keepdims=True)
        p = jnp.exp(s - m)
        denom = jnp.sum(p, axis=-1, keepdims=True)
        p = p * pl.reciprocal(denom, approx=True)
        o = jnp.einsum('bqk,bkd->bqd', p, v,
                       preferred_element_type=jnp.float32)      # (B*H, S, Dh)

        # ---- merge heads in-register and apply Wo with ONE (B*S,D)@(D,D) matmul ----
        merged = jnp.concatenate(
            [jnp.concatenate([o[b * N_HEADS + hd] for hd in range(N_HEADS)], axis=-1)
             for b in range(BATCH)], axis=0)                    # (B*S, D)
        attn = (jnp.dot(merged, wo_ref[l], preferred_element_type=jnp.float32)
                + bo_ref[l:l + 1, :])

        # ---- residual + LN1 ----
        h = _layernorm(h + attn, ln1g_ref[l:l + 1, :], ln1b_ref[l:l + 1, :])

        # ---- MLP (GELU) ----
        ff = jnp.dot(h, w1_ref[l], preferred_element_type=jnp.float32) + b1_ref[l:l + 1, :]
        # TODO(synk): PyTorch nn.GELU default is exact (erf); tanh approximation used here.
        ff = jax.nn.gelu(ff, approximate=True)
        ff = jnp.dot(ff, w2_ref[l], preferred_element_type=jnp.float32) + b2_ref[l:l + 1, :]

        # ---- residual + LN2 ----
        h = _layernorm(h + ff, ln2g_ref[l:l + 1, :], ln2b_ref[l:l + 1, :])

    # ---- mean pooling over sequence (expressed as a matmul) + classifier ----
    pooled = jnp.dot(pool_ref[...], h, preferred_element_type=jnp.float32)   # (B, D)
    hid = jnp.dot(pooled, cw1_ref[...], preferred_element_type=jnp.float32) + cb1_ref[...]
    hid = jnp.maximum(hid, 0.0)
    logits = jnp.dot(hid, cw2_ref[...], preferred_element_type=jnp.float32) + cb2_ref[...]

    # ---- batched cross-entropy (matches nn.CrossEntropyLoss, mean reduction) ----
    m = jnp.max(logits, axis=-1, keepdims=True)
    lse = m + jnp.log(jnp.sum(jnp.exp(logits - m), axis=-1, keepdims=True))  # (B, 1)
    cls = lax.broadcasted_iota(jnp.int32, (BATCH, N_CLASSES), 1)
    picked = jnp.sum(jnp.where(cls == y_ref[...], logits, 0.0),
                     axis=-1, keepdims=True)                                 # (B, 1)
    loss_ref[0, 0] = jnp.mean(lse - picked)


def _full_spec(shape):
    zeros = (0,) * len(shape)
    return pl.BlockSpec(shape, lambda i, _z=zeros: _z)


def deepspeed_forward(packed, train_X, train_y):
    """Mirrors DeepspeedModel.forward: loss(classifier(transformer(x)), y)."""
    x2d = train_X.reshape(BS, D_MODEL)
    y2d = train_y.reshape(BATCH, 1).astype(jnp.int32)

    inputs = [
        x2d,
        packed["wqkv"], packed["bqkv"], packed["wo"], packed["bo"],
        packed["w1"], packed["b1"], packed["w2"], packed["b2"],
        packed["ln1_g"], packed["ln1_b"], packed["ln2_g"], packed["ln2_b"],
        packed["pool"], packed["cw1"], packed["cb1"], packed["cw2"], packed["cb2"],
        y2d,
    ]
    in_specs = [_full_spec(a.shape) for a in inputs]

    out = pl.pallas_call(
        _fused_forward_kernel,
        out_shape=jax.ShapeDtypeStruct((1, 1), jnp.float32),
        grid=(1,),
        in_specs=in_specs,
        out_specs=pl.BlockSpec(memory_space=pltpu.MemorySpace.SMEM),
        # Single grid step (latency-bound toy shape). At larger batch/seq this would
        # grow a leading "parallel" row axis (v7x 2-TC sharding), tiled/pipelined
        # BlockSpecs, and bf16 MXU operands on v6e/v7x.
        compiler_params=pltpu.CompilerParams(
            dimension_semantics=("arbitrary",),
            vmem_limit_bytes=16 * 1024 * 1024,   # explicit: safe on v5e/v6e/v7x
        ),
    )(*inputs)
    return out[0, 0]


# ----------------------------------------------------------------------------
# Parameter setup / packing
# ----------------------------------------------------------------------------

def init_params(key):
    std = 0.02
    params = {"layers": []}
    for _ in range(N_LAYERS):
        key, *ks = jax.random.split(key, 7)
        layer = {
            "wq": jax.random.normal(ks[0], (D_MODEL, D_MODEL), jnp.float32) * std,
            "bq": jnp.zeros((D_MODEL,), jnp.float32),
            "wk": jax.random.normal(ks[1], (D_MODEL, D_MODEL), jnp.float32) * std,
            "bk": jnp.zeros((D_MODEL,), jnp.float32),
            "wv": jax.random.normal(ks[2], (D_MODEL, D_MODEL), jnp.float32) * std,
            "bv": jnp.zeros((D_MODEL,), jnp.float32),
            "wo": jax.random.normal(ks[3], (D_MODEL, D_MODEL), jnp.float32) * std,
            "bo": jnp.zeros((D_MODEL,), jnp.float32),
            "w1": jax.random.normal(ks[4], (D_MODEL, D_FF), jnp.float32) * std,
            "b1": jnp.zeros((D_FF,), jnp.float32),
            "w2": jax.random.normal(ks[5], (D_FF, D_MODEL), jnp.float32) * std,
            "b2": jnp.zeros((D_MODEL,), jnp.float32),
            "ln1_g": jnp.ones((D_MODEL,), jnp.float32),
            "ln1_b": jnp.zeros((D_MODEL,), jnp.float32),
            "ln2_g": jnp.ones((D_MODEL,), jnp.float32),
            "ln2_b": jnp.zeros((D_MODEL,), jnp.float32),
        }
        params["layers"].append(layer)
    key, k1, k2 = jax.random.split(key, 3)
    params["clf"] = {
        "w1": jax.random.normal(k1, (D_MODEL, CLF_HIDDEN), jnp.float32) * std,
        "b1": jnp.zeros((CLF_HIDDEN,), jnp.float32),
        "w2": jax.random.normal(k2, (CLF_HIDDEN, N_CLASSES), jnp.float32) * std,
        "b2": jnp.zeros((N_CLASSES,), jnp.float32),
    }
    return params


def pack_params(params):
    """Stack per-layer weights, fuse QKV, and fold the 1/sqrt(Dh) scale into Wq/bq."""
    scale = 1.0 / math.sqrt(HEAD_DIM)
    stk = lambda xs: jnp.stack(xs, axis=0)
    wqkv, bqkv = [], []
    wo, bo, w1, b1, w2, b2 = [], [], [], [], [], []
    ln1g, ln1b, ln2g, ln2b = [], [], [], []
    for lp in params["layers"]:
        wqkv.append(jnp.concatenate([lp["wq"] * scale, lp["wk"], lp["wv"]], axis=1))
        bqkv.append(jnp.concatenate([lp["bq"] * scale, lp["bk"], lp["bv"]], axis=0))
        wo.append(lp["wo"]); bo.append(lp["bo"])
        w1.append(lp["w1"]); b1.append(lp["b1"])
        w2.append(lp["w2"]); b2.append(lp["b2"])
        ln1g.append(lp["ln1_g"]); ln1b.append(lp["ln1_b"])
        ln2g.append(lp["ln2_g"]); ln2b.append(lp["ln2_b"])

    # Sequence mean-pooling as a (B, B*S) block-diagonal matrix.
    row = jnp.arange(BATCH)[:, None]
    col = jnp.arange(BS)[None, :]
    pool = jnp.where(col // SEQ == row, 1.0 / SEQ, 0.0).astype(jnp.float32)

    return {
        "wqkv": stk(wqkv), "bqkv": stk(bqkv),
        "wo": stk(wo), "bo": stk(bo),
        "w1": stk(w1), "b1": stk(b1),
        "w2": stk(w2), "b2": stk(b2),
        "ln1_g": stk(ln1g), "ln1_b": stk(ln1b),
        "ln2_g": stk(ln2g), "ln2_b": stk(ln2b),
        "pool": pool,
        "cw1": params["clf"]["w1"], "cb1": params["clf"]["b1"].reshape(1, CLF_HIDDEN),
        "cw2": params["clf"]["w2"], "cb2": params["clf"]["b2"].reshape(1, N_CLASSES),
    }


# ----------------------------------------------------------------------------
# Main
# ----------------------------------------------------------------------------

if __name__ == "__main__":
    key = jax.random.PRNGKey(0)
    k_params, k_x, k_y = jax.random.split(key, 3)

    params = init_params(k_params)
    packed = pack_params(params)
    train_X = jax.random.normal(k_x, (BATCH, SEQ, D_MODEL), jnp.float32)
    train_y = jax.random.randint(k_y, (BATCH,), 0, N_CLASSES, dtype=jnp.int32)

    loss_fn = jax.jit(deepspeed_forward)
    loss = loss_fn(packed, train_X, train_y)
    jax.block_until_ready(loss)
    assert loss.shape == () and bool(jnp.isfinite(loss))
    print("KERNEL_OK")
</pallas_src>

<mosaic_0001>
module attributes {stable_mosaic.version = 11 : i64} {
  func.func @_fused_forward_kernel(%arg0: i32, %arg1: memref<16x32xf32, #tpu.memory_space<vmem>>, %arg2: memref<2x32x96xf32, #tpu.memory_space<vmem>>, %arg3: memref<2x96xf32, #tpu.memory_space<vmem>>, %arg4: memref<2x32x32xf32, #tpu.memory_space<vmem>>, %arg5: memref<2x32xf32, #tpu.memory_space<vmem>>, %arg6: memref<2x32x64xf32, #tpu.memory_space<vmem>>, %arg7: memref<2x64xf32, #tpu.memory_space<vmem>>, %arg8: memref<2x64x32xf32, #tpu.memory_space<vmem>>, %arg9: memref<2x32xf32, #tpu.memory_space<vmem>>, %arg10: memref<2x32xf32, #tpu.memory_space<vmem>>, %arg11: memref<2x32xf32, #tpu.memory_space<vmem>>, %arg12: memref<2x32xf32, #tpu.memory_space<vmem>>, %arg13: memref<2x32xf32, #tpu.memory_space<vmem>>, %arg14: memref<2x16xf32, #tpu.memory_space<vmem>>, %arg15: memref<32x16xf32, #tpu.memory_space<vmem>>, %arg16: memref<1x16xf32, #tpu.memory_space<vmem>>, %arg17: memref<16x10xf32, #tpu.memory_space<vmem>>, %arg18: memref<1x10xf32, #tpu.memory_space<vmem>>, %arg19: memref<2x1xi32, #tpu.memory_space<vmem>>, %arg20: memref<1x1xf32, #tpu.memory_space<smem>>) attributes {dimension_semantics = [#tpu.dimension_semantics<arbitrary>], iteration_bounds = array<i64: 1>, scalar_prefetch = 0 : i64, scratch_operands = 0 : i64, tpu.core_type = #tpu.core_type<tc>, window_params = [{pipeline_mode = #tpu.pipeline_mode<synchronous>, transform_indices = @transform_0, window_bounds = array<i64: 16, 32>}, {pipeline_mode = #tpu.pipeline_mode<synchronous>, transform_indices = @transform_1, window_bounds = array<i64: 2, 32, 96>}, {pipeline_mode = #tpu.pipeline_mode<synchronous>, transform_indices = @transform_2, window_bounds = array<i64: 2, 96>}, {pipeline_mode = #tpu.pipeline_mode<synchronous>, transform_indices = @transform_3, window_bounds = array<i64: 2, 32, 32>}, {pipeline_mode = #tpu.pipeline_mode<synchronous>, transform_indices = @transform_4, window_bounds = array<i64: 2, 32>}, {pipeline_mode = #tpu.pipeline_mode<synchronous>, transform_indices = @transform_5, window_bounds = array<i64: 2, 32, 64>}, {pipeline_mode = #tpu.pipeline_mode<synchronous>, transform_indices = @transform_6, window_bounds = array<i64: 2, 64>}, {pipeline_mode = #tpu.pipeline_mode<synchronous>, transform_indices = @transform_7, window_bounds = array<i64: 2, 64, 32>}, {pipeline_mode = #tpu.pipeline_mode<synchronous>, transform_indices = @transform_8, window_bounds = array<i64: 2, 32>}, {pipeline_mode = #tpu.pipeline_mode<synchronous>, transform_indices = @transform_9, window_bounds = array<i64: 2, 32>}, {pipeline_mode = #tpu.pipeline_mode<synchronous>, transform_indices = @transform_10, window_bounds = array<i64: 2, 32>}, {pipeline_mode = #tpu.pipeline_mode<synchronous>, transform_indices = @transform_11, window_bounds = array<i64: 2, 32>}, {pipeline_mode = #tpu.pipeline_mode<synchronous>, transform_indices = @transform_12, window_bounds = array<i64: 2, 32>}, {pipeline_mode = #tpu.pipeline_mode<synchronous>, transform_indices = @transform_13, window_bounds = array<i64: 2, 16>}, {pipeline_mode = #tpu.pipeline_mode<synchronous>, transform_indices = @transform_14, window_bounds = array<i64: 32, 16>}, {pipeline_mode = #tpu.pipeline_mode<synchronous>, transform_indices = @transform_15, window_bounds = array<i64: 1, 16>}, {pipeline_mode = #tpu.pipeline_mode<synchronous>, transform_indices = @transform_16, window_bounds = array<i64: 16, 10>}, {pipeline_mode = #tpu.pipeline_mode<synchronous>, transform_indices = @transform_17, window_bounds = array<i64: 1, 10>}, {pipeline_mode = #tpu.pipeline_mode<synchronous>, transform_indices = @transform_18, window_bounds = array<i64: 2, 1>}, {transform_indices = @transform_19, window_bounds = array<i64: 1, 1>}]} {
    %c0 = arith.constant 0 : index
    %c0_0 = arith.constant 0 : index
    %0 = vector.load %arg1[%c0, %c0_0] : memref<16x32xf32, #tpu.memory_space<vmem>>, vector<16x32xf32>
    %c0_1 = arith.constant 0 : index
    %c0_2 = arith.constant 0 : index
    %c0_3 = arith.constant 0 : index
    %1 = vector.load %arg2[%c0_1, %c0_2, %c0_3] : memref<2x32x96xf32, #tpu.memory_space<vmem>>, vector<1x32x96xf32>
    %2 = vector.shape_cast %1 : vector<1x32x96xf32> to vector<32x96xf32>
    %cst = arith.constant dense<0.000000e+00> : vector<16x96xf32>
    %3 = tpu.matmul %0, %2, %cst {dimension_numbers = #tpu.dot_dimension_numbers<[1], [0], [0], [1], [0, 0, 1, 1], [], []>} : vector<16x32xf32>, vector<32x96xf32>, vector<16x96xf32> -> vector<16x96xf32>
    %c0_4 = arith.constant 0 : index
    %c0_5 = arith.constant 0 : index
    %4 = vector.load %arg3[%c0_4, %c0_5] : memref<2x96xf32, #tpu.memory_space<vmem>>, vector<1x96xf32>
    %5 = vector.broadcast %4 : vector<1x96xf32> to vector<16x96xf32>
    %6 = arith.addf %3, %5 : vector<16x96xf32>
    %7 = vector.extract_strided_slice %6 {offsets = [0, 0], sizes = [8, 8], strides = [1, 1]} : vector<16x96xf32> to vector<8x8xf32>
    %8 = vector.extract_strided_slice %6 {offsets = [0, 8], sizes = [8, 8], strides = [1, 1]} : vector<16x96xf32> to vector<8x8xf32>
    %9 = vector.extract_strided_slice %6 {offsets = [0, 16], sizes = [8, 8], strides = [1, 1]} : vector<16x96xf32> to vector<8x8xf32>
    %10 = vector.extract_strided_slice %6 {offsets = [0, 24], sizes = [8, 8], strides = [1, 1]} : vector<16x96xf32> to vector<8x8xf32>
    %11 = vector.extract_strided_slice %6 {offsets = [8, 0], sizes = [8, 8], strides = [1, 1]} : vector<16x96xf32> to vector<8x8xf32>
    %12 = vector.extract_strided_slice %6 {offsets = [8, 8], sizes = [8, 8], strides = [1, 1]} : vector<16x96xf32> to vector<8x8xf32>
    %13 = vector.extract_strided_slice %6 {offsets = [8, 16], sizes = [8, 8], strides = [1, 1]} : vector<16x96xf32> to vector<8x8xf32>
    %14 = vector.extract_strided_slice %6 {offsets = [8, 24], sizes = [8, 8], strides = [1, 1]} : vector<16x96xf32> to vector<8x8xf32>
    %15 = vector.shape_cast %7 : vector<8x8xf32> to vector<1x8x8xf32>
    %16 = vector.shape_cast %8 : vector<8x8xf32> to vector<1x8x8xf32>
    %17 = vector.shape_cast %9 : vector<8x8xf32> to vector<1x8x8xf32>
    %18 = vector.shape_cast %10 : vector<8x8xf32> to vector<1x8x8xf32>
    %19 = vector.shape_cast %11 : vector<8x8xf32> to vector<1x8x8xf32>
    %20 = vector.shape_cast %12 : vector<8x8xf32> to vector<1x8x8xf32>
    %21 = vector.shape_cast %13 : vector<8x8xf32> to vector<1x8x8xf32>
    %22 = vector.shape_cast %14 : vector<8x8xf32> to vector<1x8x8xf32>
    %23 = tpu.concatenate %15, %16, %17, %18, %19, %20, %21, %22 in 0 : vector<1x8x8xf32>, vector<1x8x8xf32>, vector<1x8x8xf32>, vector<1x8x8xf32>, vector<1x8x8xf32>, vector<1x8x8xf32>, vector<1x8x8xf32>, vector<1x8x8xf32> -> vector<8x8x8xf32>
    %24 = vector.extract_strided_slice %6 {offsets = [0, 32], sizes = [8, 8], strides = [1, 1]} : vector<16x96xf32> to vector<8x8xf32>
    %25 = vector.extract_strided_slice %6 {offsets = [0, 40], sizes = [8, 8], strides = [1, 1]} : vector<16x96xf32> to vector<8x8xf32>
    %26 = vector.extract_strided_slice %6 {offsets = [0, 48], sizes = [8, 8], strides = [1, 1]} : vector<16x96xf32> to vector<8x8xf32>
    %27 = vector.extract_strided_slice %6 {offsets = [0, 56], sizes = [8, 8], strides = [1, 1]} : vector<16x96xf32> to vector<8x8xf32>
    %28 = vector.extract_strided_slice %6 {offsets = [8, 32], sizes = [8, 8], strides = [1, 1]} : vector<16x96xf32> to vector<8x8xf32>
    %29 = vector.extract_strided_slice %6 {offsets = [8, 40], sizes = [8, 8], strides = [1, 1]} : vector<16x96xf32> to vector<8x8xf32>
    %30 = vector.extract_strided_slice %6 {offsets = [8, 48], sizes = [8, 8], strides = [1, 1]} : vector<16x96xf32> to vector<8x8xf32>
    %31 = vector.extract_strided_slice %6 {offsets = [8, 56], sizes = [8, 8], strides = [1, 1]} : vector<16x96xf32> to vector<8x8xf32>
    %32 = vector.shape_cast %24 : vector<8x8xf32> to vector<1x8x8xf32>
    %33 = vector.shape_cast %25 : vector<8x8xf32> to vector<1x8x8xf32>
    %34 = vector.shape_cast %26 : vector<8x8xf32> to vector<1x8x8xf32>
    %35 = vector.shape_cast %27 : vector<8x8xf32> to vector<1x8x8xf32>
    %36 = vector.shape_cast %28 : vector<8x8xf32> to vector<1x8x8xf32>
    %37 = vector.shape_cast %29 : vector<8x8xf32> to vector<1x8x8xf32>
    %38 = vector.shape_cast %30 : vector<8x8xf32> to vector<1x8x8xf32>
    %39 = vector.shape_cast %31 : vector<8x8xf32> to vector<1x8x8xf32>
    %40 = tpu.concatenate %32, %33, %34, %35, %36, %37, %38, %39 in 0 : vector<1x8x8xf32>, vector<1x8x8xf32>, vector<1x8x8xf32>, vector<1x8x8xf32>, vector<1x8x8xf32>, vector<1x8x8xf32>, vector<1x8x8xf32>, vector<1x8x8xf32> -> vector<8x8x8xf32>
    %41 = vector.extract_strided_slice %6 {offsets = [0, 64], sizes = [8, 8], strides = [1, 1]} : vector<16x96xf32> to vector<8x8xf32>
    %42 = vector.extract_strided_slice %6 {offsets = [0, 72], sizes = [8, 8], strides = [1, 1]} : vector<16x96xf32> to vector<8x8xf32>
    %43 = vector.extract_strided_slice %6 {offsets = [0, 80], sizes = [8, 8], strides = [1, 1]} : vector<16x96xf32> to vector<8x8xf32>
    %44 = vector.extract_strided_slice %6 {offsets = [0, 88], sizes = [8, 8], strides = [1, 1]} : vector<16x96xf32> to vector<8x8xf32>
    %45 = vector.extract_strided_slice %6 {offsets = [8, 64], sizes = [8, 8], strides = [1, 1]} : vector<16x96xf32> to vector<8x8xf32>
    %46 = vector.extract_strided_slice %6 {offsets = [8, 72], sizes = [8, 8], strides = [1, 1]} : vector<16x96xf32> to vector<8x8xf32>
    %47 = vector.extract_strided_slice %6 {offsets = [8, 80], sizes = [8, 8], strides = [1, 1]} : vector<16x96xf32> to vector<8x8xf32>
    %48 = vector.extract_strided_slice %6 {offsets = [8, 88], sizes = [8, 8], strides = [1, 1]} : vector<16x96xf32> to vector<8x8xf32>
    %49 = vector.shape_cast %41 : vector<8x8xf32> to vector<1x8x8xf32>
    %50 = vector.shape_cast %42 : vector<8x8xf32> to vector<1x8x8xf32>
    %51 = vector.shape_cast %43 : vector<8x8xf32> to vector<1x8x8xf32>
    %52 = vector.shape_cast %44 : vector<8x8xf32> to vector<1x8x8xf32>
    %53 = vector.shape_cast %45 : vector<8x8xf32> to vector<1x8x8xf32>
    %54 = vector.shape_cast %46 : vector<8x8xf32> to vector<1x8x8xf32>
    %55 = vector.shape_cast %47 : vector<8x8xf32> to vector<1x8x8xf32>
    %56 = vector.shape_cast %48 : vector<8x8xf32> to vector<1x8x8xf32>
    %57 = tpu.concatenate %49, %50, %51, %52, %53, %54, %55, %56 in 0 : vector<1x8x8xf32>, vector<1x8x8xf32>, vector<1x8x8xf32>, vector<1x8x8xf32>, vector<1x8x8xf32>, vector<1x8x8xf32>, vector<1x8x8xf32>, vector<1x8x8xf32> -> vector<8x8x8xf32>
    "tpu.trace_start"() <{level = 10 : i32, message = "bqd,bkd->bqk"}> : () -> ()
    %cst_6 = arith.constant dense<0.000000e+00> : vector<8x8x8xf32>
    %58 = tpu.matmul %23, %40, %cst_6 {dimension_numbers = #tpu.dot_dimension_numbers<[2], [2], [1], [1], [0, 0, 0, 1, 1, 1], [0], [0]>} : vector<8x8x8xf32>, vector<8x8x8xf32>, vector<8x8x8xf32> -> vector<8x8x8xf32>
    "tpu.trace_stop"() : () -> ()
    %cst_7 = arith.constant dense<0xFF800000> : vector<8x8xf32>
    %59 = vector.multi_reduction <maximumf>, %58, %cst_7 [2] : vector<8x8x8xf32> to vector<8x8xf32>
    %60 = vector.shape_cast %59 : vector<8x8xf32> to vector<8x8x1xf32>
    %61 = vector.broadcast %60 : vector<8x8x1xf32> to vector<8x8x8xf32>
    %62 = arith.subf %58, %61 : vector<8x8x8xf32>
    %63 = math.exp %62 : vector<8x8x8xf32>
    %cst_8 = arith.constant dense<0.000000e+00> : vector<8x8xf32>
    %64 = vector.multi_reduction <add>, %63, %cst_8 [2] : vector<8x8x8xf32> to vector<8x8xf32>
    %65 = vector.shape_cast %64 : vector<8x8xf32> to vector<8x8x1xf32>
    %66 = tpu.reciprocal %65 {approx = true} : vector<8x8x1xf32> -> vector<8x8x1xf32>
    %67 = vector.broadcast %66 : vector<8x8x1xf32> to vector<8x8x8xf32>
    %68 = arith.mulf %63, %67 : vector<8x8x8xf32>
    "tpu.trace_start"() <{level = 10 : i32, message = "bqk,bkd->bqd"}> : () -> ()
    %cst_9 = arith.constant dense<0.000000e+00> : vector<8x8x8xf32>
    %69 = tpu.matmul %68, %57, %cst_9 {dimension_numbers = #tpu.dot_dimension_numbers<[2], [1], [1], [2], [0, 0, 0, 1, 1, 2], [0], [0]>} : vector<8x8x8xf32>, vector<8x8x8xf32>, vector<8x8x8xf32> -> vector<8x8x8xf32>
    "tpu.trace_stop"() : () -> ()
    %70 = vector.extract_strided_slice %69 {offsets = [0, 0, 0], sizes = [1, 8, 8], strides = [1, 1, 1]} : vector<8x8x8xf32> to vector<1x8x8xf32>
    %71 = vector.shape_cast %70 : vector<1x8x8xf32> to vector<8x8xf32>
    %72 = vector.extract_strided_slice %69 {offsets = [1, 0, 0], sizes = [1, 8, 8], strides = [1, 1, 1]} : vector<8x8x8xf32> to vector<1x8x8xf32>
    %73 = vector.shape_cast %72 : vector<1x8x8xf32> to vector<8x8xf32>
    %74 = vector.extract_strided_slice %69 {offsets = [2, 0, 0], sizes = [1, 8, 8], strides = [1, 1, 1]} : vector<8x8x8xf32> to vector<1x8x8xf32>
    %75 = vector.shape_cast %74 : vector<1x8x8xf32> to vector<8x8xf32>
    %76 = vector.extract_strided_slice %69 {offsets = [3, 0, 0], sizes = [1, 8, 8], strides = [1, 1, 1]} : vector<8x8x8xf32> to vector<1x8x8xf32>
    %77 = vector.shape_cast %76 : vector<1x8x8xf32> to vector<8x8xf32>
    %78 = tpu.concatenate %71, %73, %75, %77 in 1 : vector<8x8xf32>, vector<8x8xf32>, vector<8x8xf32>, vector<8x8xf32> -> vector<8x32xf32>
    %79 = vector.extract_strided_slice %69 {offsets = [4, 0, 0], sizes = [1, 8, 8], strides = [1, 1, 1]} : vector<8x8x8xf32> to vector<1x8x8xf32>
    %80 = vector.shape_cast %79 : vector<1x8x8xf32> to vector<8x8xf32>
    %81 = vector.extract_strided_slice %69 {offsets = [5, 0, 0], sizes = [1, 8, 8], strides = [1, 1, 1]} : vector<8x8x8xf32> to vector<1x8x8xf32>
    %82 = vector.shape_cast %81 : vector<1x8x8xf32> to vector<8x8xf32>
    %83 = vector.extract_strided_slice %69 {offsets = [6, 0, 0], sizes = [1, 8, 8], strides = [1, 1, 1]} : vector<8x8x8xf32> to vector<1x8x8xf32>
    %84 = vector.shape_cast %83 : vector<1x8x8xf32> to vector<8x8xf32>
    %85 = vector.extract_strided_slice %69 {offsets = [7, 0, 0], sizes = [1, 8, 8], strides = [1, 1, 1]} : vector<8x8x8xf32> to vector<1x8x8xf32>
    %86 = vector.shape_cast %85 : vector<1x8x8xf32> to vector<8x8xf32>
    %87 = tpu.concatenate %80, %82, %84, %86 in 1 : vector<8x8xf32>, vector<8x8xf32>, vector<8x8xf32>, vector<8x8xf32> -> vector<8x32xf32>
    %88 = tpu.concatenate %78, %87 in 0 : vector<8x32xf32>, vector<8x32xf32> -> vector<16x32xf32>
    %c0_10 = arith.constant 0 : index
    %c0_11 = arith.constant 0 : index
    %c0_12 = arith.constant 0 : index
    %89 = vector.load %arg4[%c0_10, %c0_11, %c0_12] : memref<2x32x32xf32, #tpu.memory_space<vmem>>, vector<1x32x32xf32>
    %90 = vector.shape_cast %89 : vector<1x32x32xf32> to vector<32x32xf32>
    %cst_13 = arith.constant dense<0.000000e+00> : vector<16x32xf32>
    %91 = tpu.matmul %88, %90, %cst_13 {dimension_numbers = #tpu.dot_dimension_numbers<[1], [0], [0], [1], [0, 0, 1, 1], [], []>} : vector<16x32xf32>, vector<32x32xf32>, vector<16x32xf32> -> vector<16x32xf32>
    %c0_14 = arith.constant 0 : index
    %c0_15 = arith.constant 0 : index
    %92 = vector.load %arg5[%c0_14, %c0_15] : memref<2x32xf32, #tpu.memory_space<vmem>>, vector<1x32xf32>
    %93 = vector.broadcast %92 : vector<1x32xf32> to vector<16x32xf32>
    %94 = arith.addf %91, %93 : vector<16x32xf32>
    %95 = arith.addf %0, %94 : vector<16x32xf32>
    %c0_16 = arith.constant 0 : index
    %c0_17 = arith.constant 0 : index
    %96 = vector.load %arg10[%c0_16, %c0_17] : memref<2x32xf32, #tpu.memory_space<vmem>>, vector<1x32xf32>
    %c0_18 = arith.constant 0 : index
    %c0_19 = arith.constant 0 : index
    %97 = vector.load %arg11[%c0_18, %c0_19] : memref<2x32xf32, #tpu.memory_space<vmem>>, vector<1x32xf32>
    %cst_20 = arith.constant dense<0.000000e+00> : vector<16xf32>
    %98 = vector.multi_reduction <add>, %95, %cst_20 [1] : vector<16x32xf32> to vector<16xf32>
    %99 = vector.shape_cast %98 : vector<16xf32> to vector<16x1xf32>
    %cst_21 = arith.constant 3.200000e+01 : f32
    %100 = vector.broadcast %cst_21 : f32 to vector<16x1xf32>
    %101 = arith.divf %99, %100 : vector<16x1xf32>
    %102 = vector.broadcast %101 : vector<16x1xf32> to vector<16x32xf32>
    %103 = arith.subf %95, %102 : vector<16x32xf32>
    %104 = arith.mulf %103, %103 : vector<16x32xf32>
    %cst_22 = arith.constant dense<0.000000e+00> : vector<16xf32>
    %105 = vector.multi_reduction <add>, %104, %cst_22 [1] : vector<16x32xf32> to vector<16xf32>
    %106 = vector.shape_cast %105 : vector<16xf32> to vector<16x1xf32>
    %cst_23 = arith.constant 3.200000e+01 : f32
    %107 = vector.broadcast %cst_23 : f32 to vector<16x1xf32>
    %108 = arith.divf %106, %107 : vector<16x1xf32>
    %109 = vector.broadcast %101 : vector<16x1xf32> to vector<16x32xf32>
    %110 = arith.subf %95, %109 : vector<16x32xf32>
    %cst_24 = arith.constant 9.99999974E-6 : f32
    %111 = vector.broadcast %cst_24 : f32 to vector<16x1xf32>
    %112 = arith.addf %108, %111 : vector<16x1xf32>
    %113 = math.rsqrt %112 : vector<16x1xf32>
    %114 = vector.broadcast %113 : vector<16x1xf32> to vector<16x32xf32>
    %115 = arith.mulf %110, %114 : vector<16x32xf32>
    %116 = vector.broadcast %96 : vector<1x32xf32> to vector<16x32xf32>
    %117 = arith.mulf %115, %116 : vector<16x32xf32>
    %118 = vector.broadcast %97 : vector<1x32xf32> to vector<16x32xf32>
    %119 = arith.addf %117, %118 : vector<16x32xf32>
    %c0_25 = arith.constant 0 : index
    %c0_26 = arith.constant 0 : index
    %c0_27 = arith.constant 0 : index
    %120 = vector.load %arg6[%c0_25, %c0_26, %c0_27] : memref<2x32x64xf32, #tpu.memory_space<vmem>>, vector<1x32x64xf32>
    %121 = vector.shape_cast %120 : vector<1x32x64xf32> to vector<32x64xf32>
    %cst_28 = arith.constant dense<0.000000e+00> : vector<16x64xf32>
    %122 = tpu.matmul %119, %121, %cst_28 {dimension_numbers = #tpu.dot_dimension_numbers<[1], [0], [0], [1], [0, 0, 1, 1], [], []>} : vector<16x32xf32>, vector<32x64xf32>, vector<16x64xf32> -> vector<16x64xf32>
    %c0_29 = arith.constant 0 : index
    %c0_30 = arith.constant 0 : index
    %123 = vector.load %arg7[%c0_29, %c0_30] : memref<2x64xf32, #tpu.memory_space<vmem>>, vector<1x64xf32>
    %124 = vector.broadcast %123 : vector<1x64xf32> to vector<16x64xf32>
    %125 = arith.addf %122, %124 : vector<16x64xf32>
    %126 = arith.mulf %125, %125 : vector<16x64xf32>
    %127 = arith.mulf %125, %126 : vector<16x64xf32>
    %cst_31 = arith.constant 4.471500e-02 : f32
    %128 = vector.broadcast %cst_31 : f32 to vector<16x64xf32>
    %129 = arith.mulf %128, %127 : vector<16x64xf32>
    %130 = arith.addf %125, %129 : vector<16x64xf32>
    %cst_32 = arith.constant 0.797884583 : f32
    %131 = vector.broadcast %cst_32 : f32 to vector<16x64xf32>
    %132 = arith.mulf %131, %130 : vector<16x64xf32>
    %133 = math.tanh %132 : vector<16x64xf32>
    %cst_33 = arith.constant 1.000000e+00 : f32
    %134 = vector.broadcast %cst_33 : f32 to vector<16x64xf32>
    %135 = arith.addf %134, %133 : vector<16x64xf32>
    %cst_34 = arith.constant 5.000000e-01 : f32
    %136 = vector.broadcast %cst_34 : f32 to vector<16x64xf32>
    %137 = arith.mulf %136, %135 : vector<16x64xf32>
    %138 = arith.mulf %125, %137 : vector<16x64xf32>
    %c0_35 = arith.constant 0 : index
    %c0_36 = arith.constant 0 : index
    %c0_37 = arith.constant 0 : index
    %139 = vector.load %arg8[%c0_35, %c0_36, %c0_37] : memref<2x64x32xf32, #tpu.memory_space<vmem>>, vector<1x64x32xf32>
    %140 = vector.shape_cast %139 : vector<1x64x32xf32> to vector<64x32xf32>
    %cst_38 = arith.constant dense<0.000000e+00> : vector<16x32xf32>
    %141 = tpu.matmul %138, %140, %cst_38 {dimension_numbers = #tpu.dot_dimension_numbers<[1], [0], [0], [1], [0, 0, 1, 1], [], []>} : vector<16x64xf32>, vector<64x32xf32>, vector<16x32xf32> -> vector<16x32xf32>
    %c0_39 = arith.constant 0 : index
    %c0_40 = arith.constant 0 : index
    %142 = vector.load %arg9[%c0_39, %c0_40] : memref<2x32xf32, #tpu.memory_space<vmem>>, vector<1x32xf32>
    %143 = vector.broadcast %142 : vector<1x32xf32> to vector<16x32xf32>
    %144 = arith.addf %141, %143 : vector<16x32xf32>
    %145 = arith.addf %119, %144 : vector<16x32xf32>
    %c0_41 = arith.constant 0 : index
    %c0_42 = arith.constant 0 : index
    %146 = vector.load %arg12[%c0_41, %c0_42] : memref<2x32xf32, #tpu.memory_space<vmem>>, vector<1x32xf32>
    %c0_43 = arith.constant 0 : index
    %c0_44 = arith.constant 0 : index
    %147 = vector.load %arg13[%c0_43, %c0_44] : memref<2x32xf32, #tpu.memory_space<vmem>>, vector<1x32xf32>
    %cst_45 = arith.constant dense<0.000000e+00> : vector<16xf32>
    %148 = vector.multi_reduction <add>, %145, %cst_45 [1] : vector<16x32xf32> to vector<16xf32>
    %149 = vector.shape_cast %148 : vector<16xf32> to vector<16x1xf32>
    %cst_46 = arith.constant 3.200000e+01 : f32
    %150 = vector.broadcast %cst_46 : f32 to vector<16x1xf32>
    %151 = arith.divf %149, %150 : vector<16x1xf32>
    %152 = vector.broadcast %151 : vector<16x1xf32> to vector<16x32xf32>
    %153 = arith.subf %145, %152 : vector<16x32xf32>
    %154 = arith.mulf %153, %153 : vector<16x32xf32>
    %cst_47 = arith.constant dense<0.000000e+00> : vector<16xf32>
    %155 = vector.multi_reduction <add>, %154, %cst_47 [1] : vector<16x32xf32> to vector<16xf32>
    %156 = vector.shape_cast %155 : vector<16xf32> to vector<16x1xf32>
    %cst_48 = arith.constant 3.200000e+01 : f32
    %157 = vector.broadcast %cst_48 : f32 to vector<16x1xf32>
    %158 = arith.divf %156, %157 : vector<16x1xf32>
    %159 = vector.broadcast %151 : vector<16x1xf32> to vector<16x32xf32>
    %160 = arith.subf %145, %159 : vector<16x32xf32>
    %cst_49 = arith.constant 9.99999974E-6 : f32
    %161 = vector.broadcast %cst_49 : f32 to vector<16x1xf32>
    %162 = arith.addf %158, %161 : vector<16x1xf32>
    %163 = math.rsqrt %162 : vector<16x1xf32>
    %164 = vector.broadcast %163 : vector<16x1xf32> to vector<16x32xf32>
    %165 = arith.mulf %160, %164 : vector<16x32xf32>
    %166 = vector.broadcast %146 : vector<1x32xf32> to vector<16x32xf32>
    %167 = arith.mulf %165, %166 : vector<16x32xf32>
    %168 = vector.broadcast %147 : vector<1x32xf32> to vector<16x32xf32>
    %169 = arith.addf %167, %168 : vector<16x32xf32>
    %c1 = arith.constant 1 : index
    %c0_50 = arith.constant 0 : index
    %c0_51 = arith.constant 0 : index
    %170 = vector.load %arg2[%c1, %c0_50, %c0_51] : memref<2x32x96xf32, #tpu.memory_space<vmem>>, vector<1x32x96xf32>
    %171 = vector.shape_cast %170 : vector<1x32x96xf32> to vector<32x96xf32>
    %cst_52 = arith.constant dense<0.000000e+00> : vector<16x96xf32>
    %172 = tpu.matmul %169, %171, %cst_52 {dimension_numbers = #tpu.dot_dimension_numbers<[1], [0], [0], [1], [0, 0, 1, 1], [], []>} : vector<16x32xf32>, vector<32x96xf32>, vector<16x96xf32> -> vector<16x96xf32>
    %c1_53 = arith.constant 1 : index
    %c0_54 = arith.constant 0 : index
    %173 = vector.load %arg3[%c1_53, %c0_54] : memref<2x96xf32, #tpu.memory_space<vmem>>, vector<1x96xf32>
    %174 = vector.broadcast %173 : vector<1x96xf32> to vector<16x96xf32>
    %175 = arith.addf %172, %174 : vector<16x96xf32>
    %176 = vector.extract_strided_slice %175 {offsets = [0, 0], sizes = [8, 8], strides = [1, 1]} : vector<16x96xf32> to vector<8x8xf32>
    %177 = vector.extract_strided_slice %175 {offsets = [0, 8], sizes = [8, 8], strides = [1, 1]} : vector<16x96xf32> to vector<8x8xf32>
    %178 = vector.extract_strided_slice %175 {offsets = [0, 16], sizes = [8, 8], strides = [1, 1]} : vector<16x96xf32> to vector<8x8xf32>
    %179 = vector.extract_strided_slice %175 {offsets = [0, 24], sizes = [8, 8], strides = [1, 1]} : vector<16x96xf32> to vector<8x8xf32>
    %180 = vector.extract_strided_slice %175 {offsets = [8, 0], sizes = [8, 8], strides = [1, 1]} : vector<16x96xf32> to vector<8x8xf32>
    %181 = vector.extract_strided_slice %175 {offsets = [8, 8], sizes = [8, 8], strides = [1, 1]} : vector<16x96xf32> to vector<8x8xf32>
    %182 = vector.extract_strided_slice %175 {offsets = [8, 16], sizes = [8, 8], strides = [1, 1]} : vector<16x96xf32> to vector<8x8xf32>
    %183 = vector.extract_strided_slice %175 {offsets = [8, 24], sizes = [8, 8], strides = [1, 1]} : vector<16x96xf32> to vector<8x8xf32>
    %184 = vector.shape_cast %176 : vector<8x8xf32> to vector<1x8x8xf32>
    %185 = vector.shape_cast %177 : vector<8x8xf32> to vector<1x8x8xf32>
    %186 = vector.shape_cast %178 : vector<8x8xf32> to vector<1x8x8xf32>
    %187 = vector.shape_cast %179 : vector<8x8xf32> to vector<1x8x8xf32>
    %188 = vector.shape_cast %180 : vector<8x8xf32> to vector<1x8x8xf32>
    %189 = vector.shape_cast %181 : vector<8x8xf32> to vector<1x8x8xf32>
    %190 = vector.shape_cast %182 : vector<8x8xf32> to vector<1x8x8xf32>
    %191 = vector.shape_cast %183 : vector<8x8xf32> to vector<1x8x8xf32>
    %192 = tpu.concatenate %184, %185, %186, %187, %188, %189, %190, %191 in 0 : vector<1x8x8xf32>, vector<1x8x8xf32>, vector<1x8x8xf32>, vector<1x8x8xf32>, vector<1x8x8xf32>, vector<1x8x8xf32>, vector<1x8x8xf32>, vector<1x8x8xf32> -> vector<8x8x8xf32>
    %193 = vector.extract_strided_slice %175 {offsets = [0, 32], sizes = [8, 8], strides = [1, 1]} : vector<16x96xf32> to vector<8x8xf32>
    %194 = vector.extract_strided_slice %175 {offsets = [0, 40], sizes = [8, 8], strides = [1, 1]} : vector<16x96xf32> to vector<8x8xf32>
    %195 = vector.extract_strided_slice %175 {offsets = [0, 48], sizes = [8, 8], strides = [1, 1]} : vector<16x96xf32> to vector<8x8xf32>
    %196 = vector.extract_strided_slice %175 {offsets = [0, 56], sizes = [8, 8], strides = [1, 1]} : vector<16x96xf32> to vector<8x8xf32>
    %197 = vector.extract_strided_slice %175 {offsets = [8, 32], sizes = [8, 8], strides = [1, 1]} : vector<16x96xf32> to vector<8x8xf32>
    %198 = vector.extract_strided_slice %175 {offsets = [8, 40], sizes = [8, 8], strides = [1, 1]} : vector<16x96xf32> to vector<8x8xf32>
    %199 = vector.extract_strided_slice %175 {offsets = [8, 48], sizes = [8, 8], strides = [1, 1]} : vector<16x96xf32> to vector<8x8xf32>
    %200 = vector.extract_strided_slice %175 {offsets = [8, 56], sizes = [8, 8], strides = [1, 1]} : vector<16x96xf32> to vector<8x8xf32>
    %201 = vector.shape_cast %193 : vector<8x8xf32> to vector<1x8x8xf32>
    %202 = vector.shape_cast %194 : vector<8x8xf32> to vector<1x8x8xf32>
    %203 = vector.shape_cast %195 : vector<8x8xf32> to vector<1x8x8xf32>
    %204 = vector.shape_cast %196 : vector<8x8xf32> to vector<1x8x8xf32>
    %205 = vector.shape_cast %197 : vector<8x8xf32> to vector<1x8x8xf32>
    %206 = vector.shape_cast %198 : vector<8x8xf32> to vector<1x8x8xf32>
    %207 = vector.shape_cast %199 : vector<8x8xf32> to vector<1x8x8xf32>
    %208 = vector.shape_cast %200 : vector<8x8xf32> to vector<1x8x8xf32>
    %209 = tpu.concatenate %201, %202, %203, %204, %205, %206, %207, %208 in 0 : vector<1x8x8xf32>, vector<1x8x8xf32>, vector<1x8x8xf32>, vector<1x8x8xf32>, vector<1x8x8xf32>, vector<1x8x8xf32>, vector<1x8x8xf32>, vector<1x8x8xf32> -> vector<8x8x8xf32>
    %210 = vector.extract_strided_slice %175 {offsets = [0, 64], sizes = [8, 8], strides = [1, 1]} : vector<16x96xf32> to vector<8x8xf32>
    %211 = vector.extract_strided_slice %175 {offsets = [0, 72], sizes = [8, 8], strides = [1, 1]} : vector<16x96xf32> to vector<8x8xf32>
    %212 = vector.extract_strided_slice %175 {offsets = [0, 80], sizes = [8, 8], strides = [1, 1]} : vector<16x96xf32> to vector<8x8xf32>
    %213 = vector.extract_strided_slice %175 {offsets = [0, 88], sizes = [8, 8], strides = [1, 1]} : vector<16x96xf32> to vector<8x8xf32>
    %214 = vector.extract_strided_slice %175 {offsets = [8, 64], sizes = [8, 8], strides = [1, 1]} : vector<16x96xf32> to vector<8x8xf32>
    %215 = vector.extract_strided_slice %175 {offsets = [8, 72], sizes = [8, 8], strides = [1, 1]} : vector<16x96xf32> to vector<8x8xf32>
    %216 = vector.extract_strided_slice %175 {offsets = [8, 80], sizes = [8, 8], strides = [1, 1]} : vector<16x96xf32> to vector<8x8xf32>
    %217 = vector.extract_strided_slice %175 {offsets = [8, 88], sizes = [8, 8], strides = [1, 1]} : vector<16x96xf32> to vector<8x8xf32>
    %218 = vector.shape_cast %210 : vector<8x8xf32> to vector<1x8x8xf32>
    %219 = vector.shape_cast %211 : vector<8x8xf32> to vector<1x8x8xf32>
    %220 = vector.shape_cast %212 : vector<8x8xf32> to vector<1x8x8xf32>
    %221 = vector.shape_cast %213 : vector<8x8xf32> to vector<1x8x8xf32>
    %222 = vector.shape_cast %214 : vector<8x8xf32> to vector<1x8x8xf32>
    %223 = vector.shape_cast %215 : vector<8x8xf32> to vector<1x8x8xf32>
    %224 = vector.shape_cast %216 : vector<8x8xf32> to vector<1x8x8xf32>
    %225 = vector.shape_cast %217 : vector<8x8xf32> to vector<1x8x8xf32>
    %226 = tpu.concatenate %218, %219, %220, %221, %222, %223, %224, %225 in 0 : vector<1x8x8xf32>, vector<1x8x8xf32>, vector<1x8x8xf32>, vector<1x8x8xf32>, vector<1x8x8xf32>, vector<1x8x8xf32>, vector<1x8x8xf32>, vector<1x8x8xf32> -> vector<8x8x8xf32>
    "tpu.trace_start"() <{level = 10 : i32, message = "bqd,bkd->bqk"}> : () -> ()
    %cst_55 = arith.constant dense<0.000000e+00> : vector<8x8x8xf32>
    %227 = tpu.matmul %192, %209, %cst_55 {dimension_numbers = #tpu.dot_dimension_numbers<[2], [2], [1], [1], [0, 0, 0, 1, 1, 1], [0], [0]>} : vector<8x8x8xf32>, vector<8x8x8xf32>, vector<8x8x8xf32> -> vector<8x8x8xf32>
    "tpu.trace_stop"() : () -> ()
    %cst_56 = arith.constant dense<0xFF800000> : vector<8x8xf32>
    %228 = vector.multi_reduction <maximumf>, %227, %cst_56 [2] : vector<8x8x8xf32> to vector<8x8xf32>
    %229 = vector.shape_cast %228 : vector<8x8xf32> to vector<8x8x1xf32>
    %230 = vector.broadcast %229 : vector<8x8x1xf32> to vector<8x8x8xf32>
    %231 = arith.subf %227, %230 : vector<8x8x8xf32>
    %232 = math.exp %231 : vector<8x8x8xf32>
    %cst_57 = arith.constant dense<0.000000e+00> : vector<8x8xf32>
    %233 = vector.multi_reduction <add>, %232, %cst_57 [2] : vector<8x8x8xf32> to vector<8x8xf32>
    %234 = vector.shape_cast %233 : vector<8x8xf32> to vector<8x8x1xf32>
    %235 = tpu.reciprocal %234 {approx = true} : vector<8x8x1xf32> -> vector<8x8x1xf32>
    %236 = vector.broadcast %235 : vector<8x8x1xf32> to vector<8x8x8xf32>
    %237 = arith.mulf %232, %236 : vector<8x8x8xf32>
    "tpu.trace_start"() <{level = 10 : i32, message = "bqk,bkd->bqd"}> : () -> ()
    %cst_58 = arith.constant dense<0.000000e+00> : vector<8x8x8xf32>
    %238 = tpu.matmul %237, %226, %cst_58 {dimension_numbers = #tpu.dot_dimension_numbers<[2], [1], [1], [2], [0, 0, 0, 1, 1, 2], [0], [0]>} : vector<8x8x8xf32>, vector<8x8x8xf32>, vector<8x8x8xf32> -> vector<8x8x8xf32>
    "tpu.trace_stop"() : () -> ()
    %239 = vector.extract_strided_slice %238 {offsets = [0, 0, 0], sizes = [1, 8, 8], strides = [1, 1, 1]} : vector<8x8x8xf32> to vector<1x8x8xf32>
    %240 = vector.shape_cast %239 : vector<1x8x8xf32> to vector<8x8xf32>
    %241 = vector.extract_strided_slice %238 {offsets = [1, 0, 0], sizes = [1, 8, 8], strides = [1, 1, 1]} : vector<8x8x8xf32> to vector<1x8x8xf32>
    %242 = vector.shape_cast %241 : vector<1x8x8xf32> to vector<8x8xf32>
    %243 = vector.extract_strided_slice %238 {offsets = [2, 0, 0], sizes = [1, 8, 8], strides = [1, 1, 1]} : vector<8x8x8xf32> to vector<1x8x8xf32>
    %244 = vector.shape_cast %243 : vector<1x8x8xf32> to vector<8x8xf32>
    %245 = vector.extract_strided_slice %238 {offsets = [3, 0, 0], sizes = [1, 8, 8], strides = [1, 1, 1]} : vector<8x8x8xf32> to vector<1x8x8xf32>
    %246 = vector.shape_cast %245 : vector<1x8x8xf32> to vector<8x8xf32>
    %247 = tpu.concatenate %240, %242, %244, %246 in 1 : vector<8x8xf32>, vector<8x8xf32>, vector<8x8xf32>, vector<8x8xf32> -> vector<8x32xf32>
    %248 = vector.extract_strided_slice %238 {offsets = [4, 0, 0], sizes = [1, 8, 8], strides = [1, 1, 1]} : vector<8x8x8xf32> to vector<1x8x8xf32>
    %249 = vector.shape_cast %248 : vector<1x8x8xf32> to vector<8x8xf32>
    %250 = vector.extract_strided_slice %238 {offsets = [5, 0, 0], sizes = [1, 8, 8], strides = [1, 1, 1]} : vector<8x8x8xf32> to vector<1x8x8xf32>
    %251 = vector.shape_cast %250 : vector<1x8x8xf32> to vector<8x8xf32>
    %252 = vector.extract_strided_slice %238 {offsets = [6, 0, 0], sizes = [1, 8, 8], strides = [1, 1, 1]} : vector<8x8x8xf32> to vector<1x8x8xf32>
    %253 = vector.shape_cast %252 : vector<1x8x8xf32> to vector<8x8xf32>
    %254 = vector.extract_strided_slice %238 {offsets = [7, 0, 0], sizes = [1, 8, 8], strides = [1, 1, 1]} : vector<8x8x8xf32> to vector<1x8x8xf32>
    %255 = vector.shape_cast %254 : vector<1x8x8xf32> to vector<8x8xf32>
    %256 = tpu.concatenate %249, %251, %253, %255 in 1 : vector<8x8xf32>, vector<8x8xf32>, vector<8x8xf32>, vector<8x8xf32> -> vector<8x32xf32>
    %257 = tpu.concatenate %247, %256 in 0 : vector<8x32xf32>, vector<8x32xf32> -> vector<16x32xf32>
    %c1_59 = arith.constant 1 : index
    %c0_60 = arith.constant 0 : index
    %c0_61 = arith.constant 0 : index
    %258 = vector.load %arg4[%c1_59, %c0_60, %c0_61] : memref<2x32x32xf32, #tpu.memory_space<vmem>>, vector<1x32x32xf32>
    %259 = vector.shape_cast %258 : vector<1x32x32xf32> to vector<32x32xf32>
    %cst_62 = arith.constant dense<0.000000e+00> : vector<16x32xf32>
    %260 = tpu.matmul %257, %259, %cst_62 {dimension_numbers = #tpu.dot_dimension_numbers<[1], [0], [0], [1], [0, 0, 1, 1], [], []>} : vector<16x32xf32>, vector<32x32xf32>, vector<16x32xf32> -> vector<16x32xf32>
    %c1_63 = arith.constant 1 : index
    %c0_64 = arith.constant 0 : index
    %261 = vector.load %arg5[%c1_63, %c0_64] : memref<2x32xf32, #tpu.memory_space<vmem>>, vector<1x32xf32>
    %262 = vector.broadcast %261 : vector<1x32xf32> to vector<16x32xf32>
    %263 = arith.addf %260, %262 : vector<16x32xf32>
    %264 = arith.addf %169, %263 : vector<16x32xf32>
    %c1_65 = arith.constant 1 : index
    %c0_66 = arith.constant 0 : index
    %265 = vector.load %arg10[%c1_65, %c0_66] : memref<2x32xf32, #tpu.memory_space<vmem>>, vector<1x32xf32>
    %c1_67 = arith.constant 1 : index
    %c0_68 = arith.constant 0 : index
    %266 = vector.load %arg11[%c1_67, %c0_68] : memref<2x32xf32, #tpu.memory_space<vmem>>, vector<1x32xf32>
    %cst_69 = arith.constant dense<0.000000e+00> : vector<16xf32>
    %267 = vector.multi_reduction <add>, %264, %cst_69 [1] : vector<16x32xf32> to vector<16xf32>
    %268 = vector.shape_cast %267 : vector<16xf32> to vector<16x1xf32>
    %cst_70 = arith.constant 3.200000e+01 : f32
    %269 = vector.broadcast %cst_70 : f32 to vector<16x1xf32>
    %270 = arith.divf %268, %269 : vector<16x1xf32>
    %271 = vector.broadcast %270 : vector<16x1xf32> to vector<16x32xf32>
    %272 = arith.subf %264, %271 : vector<16x32xf32>
    %273 = arith.mulf %272, %272 : vector<16x32xf32>
    %cst_71 = arith.constant dense<0.000000e+00> : vector<16xf32>
    %274 = vector.multi_reduction <add>, %273, %cst_71 [1] : vector<16x32xf32> to vector<16xf32>
    %275 = vector.shape_cast %274 : vector<16xf32> to vector<16x1xf32>
    %cst_72 = arith.constant 3.200000e+01 : f32
    %276 = vector.broadcast %cst_72 : f32 to vector<16x1xf32>
    %277 = arith.divf %275, %276 : vector<16x1xf32>
    %278 = vector.broadcast %270 : vector<16x1xf32> to vector<16x32xf32>
    %279 = arith.subf %264, %278 : vector<16x32xf32>
    %cst_73 = arith.constant 9.99999974E-6 : f32
    %280 = vector.broadcast %cst_73 : f32 to vector<16x1xf32>
    %281 = arith.addf %277, %280 : vector<16x1xf32>
    %282 = math.rsqrt %281 : vector<16x1xf32>
    %283 = vector.broadcast %282 : vector<16x1xf32> to vector<16x32xf32>
    %284 = arith.mulf %279, %283 : vector<16x32xf32>
    %285 = vector.broadcast %265 : vector<1x32xf32> to vector<16x32xf32>
    %286 = arith.mulf %284, %285 : vector<16x32xf32>
    %287 = vector.broadcast %266 : vector<1x32xf32> to vector<16x32xf32>
    %288 = arith.addf %286, %287 : vector<16x32xf32>
    %c1_74 = arith.constant 1 : index
    %c0_75 = arith.constant 0 : index
    %c0_76 = arith.constant 0 : index
    %289 = vector.load %arg6[%c1_74, %c0_75, %c0_76] : memref<2x32x64xf32, #tpu.memory_space<vmem>>, vector<1x32x64xf32>
    %290 = vector.shape_cast %289 : vector<1x32x64xf32> to vector<32x64xf32>
    %cst_77 = arith.constant dense<0.000000e+00> : vector<16x64xf32>
    %291 = tpu.matmul %288, %290, %cst_77 {dimension_numbers = #tpu.dot_dimension_numbers<[1], [0], [0], [1], [0, 0, 1, 1], [], []>} : vector<16x32xf32>, vector<32x64xf32>, vector<16x64xf32> -> vector<16x64xf32>
    %c1_78 = arith.constant 1 : index
    %c0_79 = arith.constant 0 : index
    %292 = vector.load %arg7[%c1_78, %c0_79] : memref<2x64xf32, #tpu.memory_space<vmem>>, vector<1x64xf32>
    %293 = vector.broadcast %292 : vector<1x64xf32> to vector<16x64xf32>
    %294 = arith.addf %291, %293 : vector<16x64xf32>
    %295 = arith.mulf %294, %294 : vector<16x64xf32>
    %296 = arith.mulf %294, %295 : vector<16x64xf32>
    %cst_80 = arith.constant 4.471500e-02 : f32
    %297 = vector.broadcast %cst_80 : f32 to vector<16x64xf32>
    %298 = arith.mulf %297, %296 : vector<16x64xf32>
    %299 = arith.addf %294, %298 : vector<16x64xf32>
    %cst_81 = arith.constant 0.797884583 : f32
    %300 = vector.broadcast %cst_81 : f32 to vector<16x64xf32>
    %301 = arith.mulf %300, %299 : vector<16x64xf32>
    %302 = math.tanh %301 : vector<16x64xf32>
    %cst_82 = arith.constant 1.000000e+00 : f32
    %303 = vector.broadcast %cst_82 : f32 to vector<16x64xf32>
    %304 = arith.addf %303, %302 : vector<16x64xf32>
    %cst_83 = arith.constant 5.000000e-01 : f32
    %305 = vector.broadcast %cst_83 : f32 to vector<16x64xf32>
    %306 = arith.mulf %305, %304 : vector<16x64xf32>
    %307 = arith.mulf %294, %306 : vector<16x64xf32>
    %c1_84 = arith.constant 1 : index
    %c0_85 = arith.constant 0 : index
    %c0_86 = arith.constant 0 : index
    %308 = vector.load %arg8[%c1_84, %c0_85, %c0_86] : memref<2x64x32xf32, #tpu.memory_space<vmem>>, vector<1x64x32xf32>
    %309 = vector.shape_cast %308 : vector<1x64x32xf32> to vector<64x32xf32>
    %cst_87 = arith.constant dense<0.000000e+00> : vector<16x32xf32>
    %310 = tpu.matmul %307, %309, %cst_87 {dimension_numbers = #tpu.dot_dimension_numbers<[1], [0], [0], [1], [0, 0, 1, 1], [], []>} : vector<16x64xf32>, vector<64x32xf32>, vector<16x32xf32> -> vector<16x32xf32>
    %c1_88 = arith.constant 1 : index
    %c0_89 = arith.constant 0 : index
    %311 = vector.load %arg9[%c1_88, %c0_89] : memref<2x32xf32, #tpu.memory_space<vmem>>, vector<1x32xf32>
    %312 = vector.broadcast %311 : vector<1x32xf32> to vector<16x32xf32>
    %313 = arith.addf %310, %312 : vector<16x32xf32>
    %314 = arith.addf %288, %313 : vector<16x32xf32>
    %c1_90 = arith.constant 1 : index
    %c0_91 = arith.constant 0 : index
    %315 = vector.load %arg12[%c1_90, %c0_91] : memref<2x32xf32, #tpu.memory_space<vmem>>, vector<1x32xf32>
    %c1_92 = arith.constant 1 : index
    %c0_93 = arith.constant 0 : index
    %316 = vector.load %arg13[%c1_92, %c0_93] : memref<2x32xf32, #tpu.memory_space<vmem>>, vector<1x32xf32>
    %cst_94 = arith.constant dense<0.000000e+00> : vector<16xf32>
    %317 = vector.multi_reduction <add>, %314, %cst_94 [1] : vector<16x32xf32> to vector<16xf32>
    %318 = vector.shape_cast %317 : vector<16xf32> to vector<16x1xf32>
    %cst_95 = arith.constant 3.200000e+01 : f32
    %319 = vector.broadcast %cst_95 : f32 to vector<16x1xf32>
    %320 = arith.divf %318, %319 : vector<16x1xf32>
    %321 = vector.broadcast %320 : vector<16x1xf32> to vector<16x32xf32>
    %322 = arith.subf %314, %321 : vector<16x32xf32>
    %323 = arith.mulf %322, %322 : vector<16x32xf32>
    %cst_96 = arith.constant dense<0.000000e+00> : vector<16xf32>
    %324 = vector.multi_reduction <add>, %323, %cst_96 [1] : vector<16x32xf32> to vector<16xf32>
    %325 = vector.shape_cast %324 : vector<16xf32> to vector<16x1xf32>
    %cst_97 = arith.constant 3.200000e+01 : f32
    %326 = vector.broadcast %cst_97 : f32 to vector<16x1xf32>
    %327 = arith.divf %325, %326 : vector<16x1xf32>
    %328 = vector.broadcast %320 : vector<16x1xf32> to vector<16x32xf32>
    %329 = arith.subf %314, %328 : vector<16x32xf32>
    %cst_98 = arith.constant 9.99999974E-6 : f32
    %330 = vector.broadcast %cst_98 : f32 to vector<16x1xf32>
    %331 = arith.addf %327, %330 : vector<16x1xf32>
    %332 = math.rsqrt %331 : vector<16x1xf32>
    %333 = vector.broadcast %332 : vector<16x1xf32> to vector<16x32xf32>
    %334 = arith.mulf %329, %333 : vector<16x32xf32>
    %335 = vector.broadcast %315 : vector<1x32xf32> to vector<16x32xf32>
    %336 = arith.mulf %334, %335 : vector<16x32xf32>
    %337 = vector.broadcast %316 : vector<1x32xf32> to vector<16x32xf32>
    %338 = arith.addf %336, %337 : vector<16x32xf32>
    %c0_99 = arith.constant 0 : index
    %c0_100 = arith.constant 0 : index
    %339 = vector.load %arg14[%c0_99, %c0_100] : memref<2x16xf32, #tpu.memory_space<vmem>>, vector<2x16xf32>
    %cst_101 = arith.constant dense<0.000000e+00> : vector<2x32xf32>
    %340 = tpu.matmul %339, %338, %cst_101 {dimension_numbers = #tpu.dot_dimension_numbers<[1], [0], [0], [1], [0, 0, 1, 1], [], []>} : vector<2x16xf32>, vector<16x32xf32>, vector<2x32xf32> -> vector<2x32xf32>
    %c0_102 = arith.constant 0 : index
    %c0_103 = arith.constant 0 : index
    %341 = vector.load %arg15[%c0_102, %c0_103] : memref<32x16xf32, #tpu.memory_space<vmem>>, vector<32x16xf32>
    %cst_104 = arith.constant dense<0.000000e+00> : vector<2x16xf32>
    %342 = tpu.matmul %340, %341, %cst_104 {dimension_numbers = #tpu.dot_dimension_numbers<[1], [0], [0], [1], [0, 0, 1, 1], [], []>} : vector<2x32xf32>, vector<32x16xf32>, vector<2x16xf32> -> vector<2x16xf32>
    %c0_105 = arith.constant 0 : index
    %c0_106 = arith.constant 0 : index
    %343 = vector.load %arg16[%c0_105, %c0_106] : memref<1x16xf32, #tpu.memory_space<vmem>>, vector<1x16xf32>
    %344 = vector.broadcast %343 : vector<1x16xf32> to vector<2x16xf32>
    %345 = arith.addf %342, %344 : vector<2x16xf32>
    %cst_107 = arith.constant 0.000000e+00 : f32
    %346 = vector.broadcast %cst_107 : f32 to vector<2x16xf32>
    %347 = arith.maximumf %345, %346 : vector<2x16xf32>
    %c0_108 = arith.constant 0 : index
    %c0_109 = arith.constant 0 : index
    %348 = vector.load %arg17[%c0_108, %c0_109] : memref<16x10xf32, #tpu.memory_space<vmem>>, vector<16x10xf32>
    %cst_110 = arith.constant dense<0.000000e+00> : vector<2x10xf32>
    %349 = tpu.matmul %347, %348, %cst_110 {dimension_numbers = #tpu.dot_dimension_numbers<[1], [0], [0], [1], [0, 0, 1, 1], [], []>} : vector<2x16xf32>, vector<16x10xf32>, vector<2x10xf32> -> vector<2x10xf32>
    %c0_111 = arith.constant 0 : index
    %c0_112 = arith.constant 0 : index
    %350 = vector.load %arg18[%c0_111, %c0_112] : memref<1x10xf32, #tpu.memory_space<vmem>>, vector<1x10xf32>
    %351 = vector.broadcast %350 : vector<1x10xf32> to vector<2x10xf32>
    %352 = arith.addf %349, %351 : vector<2x10xf32>
    %cst_113 = arith.constant dense<0xFF800000> : vector<2xf32>
    %353 = vector.multi_reduction <maximumf>, %352, %cst_113 [1] : vector<2x10xf32> to vector<2xf32>
    %354 = vector.shape_cast %353 : vector<2xf32> to vector<2x1xf32>
    %355 = vector.broadcast %354 : vector<2x1xf32> to vector<2x10xf32>
    %356 = arith.subf %352, %355 : vector<2x10xf32>
    %357 = math.exp %356 : vector<2x10xf32>
    %cst_114 = arith.constant dense<0.000000e+00> : vector<2xf32>
    %358 = vector.multi_reduction <add>, %357, %cst_114 [1] : vector<2x10xf32> to vector<2xf32>
    %359 = vector.shape_cast %358 : vector<2xf32> to vector<2x1xf32>
    %360 = math.log %359 : vector<2x1xf32>
    %361 = arith.addf %354, %360 : vector<2x1xf32>
    %362 = tpu.iota {dimensions = array<i32: 1>} : vector<2x10xi32>
    %c0_115 = arith.constant 0 : index
    %c0_116 = arith.constant 0 : index
    %363 = vector.load %arg19[%c0_115, %c0_116] : memref<2x1xi32, #tpu.memory_space<vmem>>, vector<2x1xi32>
    %364 = vector.broadcast %363 : vector<2x1xi32> to vector<2x10xi32>
    %365 = arith.cmpi eq, %362, %364 : vector<2x10xi32>
    %cst_117 = arith.constant 0.000000e+00 : f32
    %366 = vector.broadcast %cst_117 : f32 to vector<2x10xf32>
    %367 = arith.select %365, %352, %366 : vector<2x10xi1>, vector<2x10xf32>
    %cst_118 = arith.constant dense<0.000000e+00> : vector<2xf32>
    %368 = vector.multi_reduction <add>, %367, %cst_118 [1] : vector<2x10xf32> to vector<2xf32>
    %369 = vector.shape_cast %368 : vector<2xf32> to vector<2x1xf32>
    %370 = arith.subf %361, %369 : vector<2x1xf32>
    %371 = vector.shape_cast %370 : vector<2x1xf32> to vector<1x2x1xf32>
    %cst_119 = arith.constant dense<0.000000e+00> : vector<1xf32>
    %372 = vector.multi_reduction <add>, %371, %cst_119 [1, 2] : vector<1x2x1xf32> to vector<1xf32>
    %373 = vector.shape_cast %372 : vector<1xf32> to vector<1x1x1xf32>
    %374 = vector.extract %373[0, 0, 0] : f32 from vector<1x1x1xf32>
    %cst_120 = arith.constant 2.000000e+00 : f32
    %375 = arith.divf %374, %cst_120 : f32
    %c0_121 = arith.constant 0 : index
    %c0_122 = arith.constant 0 : index
    %376 = memref.load %arg20[%c0_121, %c0_122] : memref<1x1xf32, #tpu.memory_space<smem>>
    memref.store %375, %arg20[%c0_121, %c0_122] : memref<1x1xf32, #tpu.memory_space<smem>>
    return
  }
  func.func @transform_0(%arg0: i32) -> (i32, i32) {
    %c0_i32 = arith.constant 0 : i32
    %c0_i32_0 = arith.constant 0 : i32
    %c0_i32_1 = arith.constant 0 : i32
    return %c0_i32, %c0_i32_0 : i32, i32
  }
  func.func @transform_1(%arg0: i32) -> (i32, i32, i32) {
    %c0_i32 = arith.constant 0 : i32
    %c0_i32_0 = arith.constant 0 : i32
    %c0_i32_1 = arith.constant 0 : i32
    %c0_i32_2 = arith.constant 0 : i32
    return %c0_i32, %c0_i32_0, %c0_i32_1 : i32, i32, i32
  }
  func.func @transform_2(%arg0: i32) -> (i32, i32) {
    %c0_i32 = arith.constant 0 : i32
    %c0_i32_0 = arith.constant 0 : i32
    %c0_i32_1 = arith.constant 0 : i32
    return %c0_i32, %c0_i32_0 : i32, i32
  }
  func.func @transform_3(%arg0: i32) -> (i32, i32, i32) {
    %c0_i32 = arith.constant 0 : i32
    %c0_i32_0 = arith.constant 0 : i32
    %c0_i32_1 = arith.constant 0 : i32
    %c0_i32_2 = arith.constant 0 : i32
    return %c0_i32, %c0_i32_0, %c0_i32_1 : i32, i32, i32
  }
  func.func @transform_4(%arg0: i32) -> (i32, i32) {
    %c0_i32 = arith.constant 0 : i32
    %c0_i32_0 = arith.constant 0 : i32
    %c0_i32_1 = arith.constant 0 : i32
    return %c0_i32, %c0_i32_0 : i32, i32
  }
  func.func @transform_5(%arg0: i32) -> (i32, i32, i32) {
    %c0_i32 = arith.constant 0 : i32
    %c0_i32_0 = arith.constant 0 : i32
    %c0_i32_1 = arith.constant 0 : i32
    %c0_i32_2 = arith.constant 0 : i32
    return %c0_i32, %c0_i32_0, %c0_i32_1 : i32, i32, i32
  }
  func.func @transform_6(%arg0: i32) -> (i32, i32) {
    %c0_i32 = arith.constant 0 : i32
    %c0_i32_0 = arith.constant 0 : i32
    %c0_i32_1 = arith.constant 0 : i32
    return %c0_i32, %c0_i32_0 : i32, i32
  }
  func.func @transform_7(%arg0: i32) -> (i32, i32, i32) {
    %c0_i32 = arith.constant 0 : i32
    %c0_i32_0 = arith.constant 0 : i32
    %c0_i32_1 = arith.constant 0 : i32
    %c0_i32_2 = arith.constant 0 : i32
    return %c0_i32, %c0_i32_0, %c0_i32_1 : i32, i32, i32
  }
  func.func @transform_8(%arg0: i32) -> (i32, i32) {
    %c0_i32 = arith.constant 0 : i32
    %c0_i32_0 = arith.constant 0 : i32
    %c0_i32_1 = arith.constant 0 : i32
    return %c0_i32, %c0_i32_0 : i32, i32
  }
  func.func @transform_9(%arg0: i32) -> (i32, i32) {
    %c0_i32 = arith.constant 0 : i32
    %c0_i32_0 = arith.constant 0 : i32
    %c0_i32_1 = arith.constant 0 : i32
    return %c0_i32, %c0_i32_0 : i32, i32
  }
  func.func @transform_10(%arg0: i32) -> (i32, i32) {
    %c0_i32 = arith.constant 0 : i32
    %c0_i32_0 = arith.constant 0 : i32
    %c0_i32_1 = arith.constant 0 : i32
    return %c0_i32, %c0_i32_0 : i32, i32
  }
  func.func @transform_11(%arg0: i32) -> (i32, i32) {
    %c0_i32 = arith.constant 0 : i32
    %c0_i32_0 = arith.constant 0 : i32
    %c0_i32_1 = arith.constant 0 : i32
    return %c0_i32, %c0_i32_0 : i32, i32
  }
  func.func @transform_12(%arg0: i32) -> (i32, i32) {
    %c0_i32 = arith.constant 0 : i32
    %c0_i32_0 = arith.constant 0 : i32
    %c0_i32_1 = arith.constant 0 : i32
    return %c0_i32, %c0_i32_0 : i32, i32
  }
  func.func @transform_13(%arg0: i32) -> (i32, i32) {
    %c0_i32 = arith.constant 0 : i32
    %c0_i32_0 = arith.constant 0 : i32
    %c0_i32_1 = arith.constant 0 : i32
    return %c0_i32, %c0_i32_0 : i32, i32
  }
  func.func @transform_14(%arg0: i32) -> (i32, i32) {
    %c0_i32 = arith.constant 0 : i32
    %c0_i32_0 = arith.constant 0 : i32
    %c0_i32_1 = arith.constant 0 : i32
    return %c0_i32, %c0_i32_0 : i32, i32
  }
  func.func @transform_15(%arg0: i32) -> (i32, i32) {
    %c0_i32 = arith.constant 0 : i32
    %c0_i32_0 = arith.constant 0 : i32
    %c0_i32_1 = arith.constant 0 : i32
    return %c0_i32, %c0_i32_0 : i32, i32
  }
  func.func @transform_16(%arg0: i32) -> (i32, i32) {
    %c0_i32 = arith.constant 0 : i32
    %c0_i32_0 = arith.constant 0 : i32
    %c0_i32_1 = arith.constant 0 : i32
    return %c0_i32, %c0_i32_0 : i32, i32
  }
  func.func @transform_17(%arg0: i32) -> (i32, i32) {
    %c0_i32 = arith.constant 0 : i32
    %c0_i32_0 = arith.constant 0 : i32
    %c0_i32_1 = arith.constant 0 : i32
    return %c0_i32, %c0_i32_0 : i32, i32
  }
  func.func @transform_18(%arg0: i32) -> (i32, i32) {
    %c0_i32 = arith.constant 0 : i32
    %c0_i32_0 = arith.constant 0 : i32
    %c0_i32_1 = arith.constant 0 : i32
    return %c0_i32, %c0_i32_0 : i32, i32
  }
  func.func @transform_19(%arg0: i32) -> (i32, i32) {
    %c0_i32 = arith.constant 0 : i32
    %c0_i32_0 = arith.constant 0 : i32
    %c0_i32_1 = arith.constant 0 : i32
    return %c0_i32, %c0_i32_0 : i32, i32
  }
}

</mosaic_0001>

<bundles_post_ra>
// kernel: deepspeed_forward.1
= control target key start
LH: loop header
LB: loop body
LE: loop exit
PB: predicated region body
PF: predicated region fallthrough
CT: control target
= control target key end

     0   :  { %s5616_s0 = inlined_call_operand.vmem [shape: f32[16,32], index: 0, kind: input, shape index: {}]   ;;  %s5617_s1 = inlined_call_operand.vmem [shape: f32[2,32,96], index: 1, kind: input, shape index: {}]   ;;  %s5618_s2 = inlined_call_operand.vmem [shape: f32[2,96], index: 2, kind: input, shape index: {}]   ;;  %s5619_s3 = inlined_call_operand.vmem [shape: f32[2,32,32], index: 3, kind: input, shape index: {}]   ;;  %s5620_s4 = inlined_call_operand.vmem [shape: f32[2,32], index: 4, kind: input, shape index: {}]   ;;  %s5621_s5 = inlined_call_operand.vmem [shape: f32[2,32,64], index: 5, kind: input, shape index: {}]   ;;  %s5622_s6 = inlined_call_operand.vmem [shape: f32[2,64], index: 6, kind: input, shape index: {}]   ;;  %s5623_s7 = inlined_call_operand.vmem [shape: f32[2,64,32], index: 7, kind: input, shape index: {}]   ;;  %s5624_s8 = inlined_call_operand.vmem [shape: f32[2,32], index: 8, kind: input, shape index: {}]   ;;  %s5625_s9 = inlined_call_operand.vmem [shape: f32[2,32], index: 9, kind: input, shape index: {}]   ;;  %s5626_s10 = inlined_call_operand.vmem [shape: f32[2,32], index: 10, kind: input, shape index: {}]   ;;  %s5627_s11 = inlined_call_operand.vmem [shape: f32[2,32], index: 11, kind: input, shape index: {}]   ;;  %s5628_s12 = inlined_call_operand.vmem [shape: f32[2,32], index: 12, kind: input, shape index: {}]   ;;  %s5629_s13 = inlined_call_operand.hbm [shape: f32[2,16], index: 13, kind: input, shape index: {}]   ;;  %s5630_s14 = inlined_call_operand.vmem [shape: f32[32,16], index: 14, kind: input, shape index: {}]   ;;  %s5631_s15 = inlined_call_operand.hbm [shape: f32[1,16], index: 15, kind: input, shape index: {}]   ;;  %s5632_s16 = inlined_call_operand.vmem [shape: f32[16,10], index: 16, kind: input, shape index: {}]   ;;  %s5633_s17 = inlined_call_operand.hbm [shape: f32[1,10], index: 17, kind: input, shape index: {}]   ;;  %s5634_s18 = inlined_call_operand.vmem [shape: s32[2,1], index: 18, kind: input, shape index: {}]   ;;  %s5635_s19 = inlined_call_operand.hbm [shape: f32[1,1], index: 19, kind: output, shape index: {}]  }
   0x1   :  { %5642 = sst [smem:[#allocation12_spill]] %s5616_s0 }
   0x2   :  { %5643 = sst [smem:[#allocation13_spill]] %s5617_s1 }
   0x3   :  { %5644 = sst [smem:[#allocation14_spill]] %s5618_s2 }
   0x4   :  { %5645 = sst [smem:[#allocation15_spill]] %s5619_s3 }
   0x5   :  { %24 = vsyncpa [#allocation3], 0 }
   0x6   :  { %25 = vsyncpa [#allocation6], 0 }
   0x7   :  { %26 = vsyncpa [#allocation4], 0  ;;  %s4845_s0 = smov [#allocation5]   ;;  %s4846_s20 = smov [#allocation2]  }
   0x8   :  { %s71_s30 = sshll.u32 %s4845_s0, 4  ;;  %s59_s21 = sshll.u32 %s4846_s20, 4  ;;  %s72_s30 = int_to_ptr.vmem [resolvable:$true] %s71_s30  ;;  %s60_s21 = int_to_ptr.vmem [resolvable:$true] %s59_s21 }
   0x9   :  { %s4763_s2 = scalar_lea.hbm %s5631_s15, 16 }
   0xa   :  { %p4764_p0 = scmp.ne.s32.totalorder %s5631_s15, %s4763_s2  ;;  %p4767_p1 = scmp.lt.u32.totalorder %s4763_s2, %s5631_s15 }
   0xc   :  { %p4769_p2 = pnand %p4767_p1, %p4764_p0 }
   0xe   :  { %4772 = shalt.err (!%p4769_p2)
}
   0xf   :  { %s4773_s26 = scalar_lea.vmem %s72_s30, 16  ;;  %s4777_s27 = scalar_lea.vmem %s72_s30, 32 }
  0x10   :  { %p4774_p3 = scmp.ne.s32.totalorder %s72_s30, %s4773_s26  ;;  %p4778_p4 = scmp.lt.s32.totalorder %s72_s30, %s72_s30 }
  0x11   :  { %p4779_p5 = scmp.lt.s32.totalorder %s4777_s27, %s4773_s26 }
  0x13   :  { %p4780_p6 = por %p4779_p5, %p4778_p4 }
  0x15   :  { %p4781_p7 = pnand %p4780_p6, %p4774_p3 }
  0x17   :  { %4784 = shalt.err (!%p4781_p7)
}
  0x18   :  { %74 = dma.hbm_to_vmem [thread:$0]  %s5631_s15, 16, %s72_s30, [#allocation6]  }
  0x19   :  { %s4785_s1 = scalar_lea.hbm %s5629_s13, 32 }
  0x1a   :  { %p4786_p8 = scmp.ne.s32.totalorder %s5629_s13, %s4785_s1  ;;  %p4789_p9 = scmp.lt.u32.totalorder %s4785_s1, %s5629_s13 }
  0x1c   :  { %p4791_p10 = pnand %p4789_p9, %p4786_p8 }
  0x1e   :  { %4794 = shalt.err (!%p4791_p10)
}
  0x1f   :  { %s4795_s25 = scalar_lea.vmem %s60_s21, 32  ;;  %p4800_p12 = scmp.lt.s32.totalorder %s60_s21, %s60_s21 }
  0x20   :  { %p4796_p11 = scmp.ne.s32.totalorder %s60_s21, %s4795_s25  ;;  %p4801_p13 = scmp.lt.s32.totalorder %s4795_s25, %s4795_s25 }
  0x22   :  { %p4802_p0 = por %p4801_p13, %p4800_p12 }
  0x24   :  { %p4803_p1 = pnand %p4802_p0, %p4796_p11 }
  0x26   :  { %4806 = shalt.err (!%p4803_p1)
}
  0x27   :  { %62 = dma.hbm_to_vmem [thread:$0]  %s5629_s13, 32, %s60_s21, [#allocation3]  }
  0x28   :  { %s4847_s3 = smov [#allocation7]   ;;  %s4807_s29 = scalar_lea.hbm %s5633_s17, 16 }
  0x29   :  { %s83_s26 = sshll.u32 %s4847_s3, 4  ;;  %p4808_p2 = scmp.ne.s32.totalorder %s5633_s17, %s4807_s29  ;;  %s84_s26 = int_to_ptr.vmem [resolvable:$true] %s83_s26 }
  0x2a   :  { %p4811_p3 = scmp.lt.u32.totalorder %s4807_s29, %s5633_s17 }
  0x2c   :  { %p4813_p4 = pnand %p4811_p3, %p4808_p2 }
  0x2e   :  { %4816 = shalt.err (!%p4813_p4)
}
  0x2f   :  { %s4817_s2 = scalar_lea.vmem %s84_s26, 16  ;;  %s4821_s13 = scalar_lea.vmem %s84_s26, 32 }
  0x30   :  { %p4818_p5 = scmp.ne.s32.totalorder %s84_s26, %s4817_s2  ;;  %p4822_p6 = scmp.lt.s32.totalorder %s84_s26, %s84_s26 }
  0x31   :  { %p4823_p7 = scmp.lt.s32.totalorder %s4821_s13, %s4817_s2 }
  0x33   :  { %p4824_p8 = por %p4823_p7, %p4822_p6 }
  0x35   :  { %p4825_p9 = pnand %p4824_p8, %p4818_p5 }
  0x37   :  { %4828 = shalt.err (!%p4825_p9)
}
  0x38   :  { %86 = dma.hbm_to_vmem [thread:$0]  %s5633_s17, 16, %s84_s26, [#allocation6]  }
  0x39   :  { %4839 = dma.done.wait [#allocation3], 32  }
  0x3a   :  { %4840 = vsyncadd [#allocation3], 4294967264 }
  0x3b   :  { %4841 = dma.done.wait [#allocation6], 32  }
  0x3c   :  { %4842 = vsyncadd [#allocation6], 4294967264  ;;  %vm109_vm0 = vcmask 261120   ;;  %s5646_s15 = sld [smem:[#allocation13_spill]]  ;;  %s5647_s20 = sld [smem:[#allocation12_spill]]  ;;  %v4848_v10 = vmov 0.0  }
  0x3d   :  { %s5648_s21 = sld [smem:[#allocation14_spill]]  ;;  %4282 = vmatprep.subr.mxu1 %v4848_v10  ;;  %s4849_s23 = smov 104   ;;  %vm4851_vm1 = vmmov 0   ;;  %vm207_vm2 = vcmask 64512   ;;  %vm1523_vm3 = vcmask 130048   ;;  %vm1525_vm4 = vcmask 195584  }
  0x3e   :  { %s4850_s24 = smov 120   ;;  %4284 = vmatprep.mubr.msk.f32.mxu1 %vm4851_vm1, %v4848_v10  ;;  %s4852_s25 = smov 112   ;;  %vm1796_vm5 = vcmask 523264   ;;  %vm3979_vm6 = vcmask 74752   ;;  %vm4004_vm8 = vcmask 1024  }
  0x3f   :  { %s4853_s30 = smov 96   ;;  %s4854_s3 = smov 64  }
  0x40   :  { %s5649_s29 = sld [smem:[#allocation15_spill]]  ;;  %s4855_s0 = smov 8  }
  0x41   :  { %s4856_s13 = smov 16   ;;  %s5640_s27 = smov 24  }
  0x42   :  { %v100_v0 = vld [vmem:[%s5646_s15] sm:$0xff]  ;;  %v101_v1 = vld [vmem:[%s5646_s15 + $0x8] sm:$0xff]  ;;  %v102_v2 = vld [vmem:[%s5646_s15 + $0x10] sm:$0xff]  ;;  %s5650_s17 = smov 24   ;;  %s4829_s26 = scalar_lea.hbm %s5635_s19, 16 }
  0x43   :  { %v4560_v3 = vpack.c.bf16 %v101_v1, %v100_v0  ;;  %v103_v4 = vld [vmem:[%s5646_s15 + $0x18] sm:$0xff]  ;;  %v5012_v5 = vld [vmem:[%s5647_s20] sm:$0xff]  ;;  %v5019_v7 = vld [vmem:[%s5647_s20 + $0x8] sm:$0xff]  ;;  %p4830_p10 = scmp.ne.s32.totalorder %s5635_s19, %s4829_s26  ;;  %p4833_p11 = scmp.lt.u32.totalorder %s4829_s26, %s5635_s19 }
  0x44   :  { %v4564_v6 = vpack.c.bf16 %v103_v4, %v102_v2  ;;  %4279 = vmatprep.mubr.msk.f32.mxu0 %vm109_vm0, %v5012_v5  ;;  %v4035_v8 = vld [vmem:[%s5648_s21] ss:$0 sm:$0xff] }
  0x45   :  { %4561 = vmatprep.subr.bf16.mxu0 %v4560_v3  ;;  %p4835_p12 = pnand %p4833_p11, %p4830_p10 }
  0x46   :  { %4563 = vmatpush3.bf16.msra.mxu0 %v4560_v3 }
  0x47   :  { %4565 = vmatprep.subr.bf16.mxu0 %v4564_v6 }
  0x4a   :  { %4567 = vmatpush3.bf16.msra.mxu0 %v4564_v6 }
  0x4b   :  { %4292 = vmatprep.subr.mxu0 %v4848_v10 }
  0x4d   :  { %4280 = vmatmul.mubr.msk.f32.vlgmr.msra.gmra.mrb[0].mxu0 %vm109_vm0, %v5019_v7 }
  0x4e   :  { %4294 = vmatprep.mubr.msk.f32.mxu0 %vm4851_vm1, %v4848_v10 }
 0x120   :  { %v4281_v9 = vpop.f32.mrb[0].mxu0 }
 0x121   :  { %v182_v11 = vpop.f32.mrb[1].mxu0  ;;  %v5038_v13 = vadd.f32 %v4281_v9, %v4035_v8 }
 0x122   :  { %v5028_v12 = vadd.f32 %v4035_v8, %v182_v11 }
 0x124   :  { %196 = vrot.lane.b32.xlu1 %v5028_v12, %s4849_s23  ;;  %192 = vrot.lane.b32.xlu0 %v5028_v12, %s4850_s24 }
 0x128   :  { %199 = vrot.lane.b32.xlu1 %v5038_v13, %s4850_s24  ;;  %194 = vrot.lane.b32.xlu0 %v5028_v12, %s4852_s25 }
 0x12c   :  { %203 = vrot.lane.b32.xlu1 %v5038_v13, %s4849_s23  ;;  %201 = vrot.lane.b32.xlu0 %v5038_v13, %s4852_s25 }
 0x130   :  { %205 = vrot.lane.b32.xlu0 %v5028_v12, %s4853_s30 }
 0x196   :  { %v5050_v14 = vpop.permute.xlu1 %196  ;;  %v5052_v15 = vpop.permute.xlu0 %192 }
 0x197   :  { %282 = vrot.lane.b32.xlu1 %v5052_v15, %s4853_s30 }
 0x19a   :  { %v5056_v16 = vpop.permute.xlu0 %194  ;;  %v5062_v17 = vpop.permute.xlu1 %199 }
 0x19b   :  { %434 = vrot.lane.b32.xlu1 %v5050_v14, %s4853_s30  ;;  %358 = vrot.lane.b32.xlu0 %v5056_v16, %s4853_s30 }
 0x19e   :  { %v5064_v18 = vpop.permute.xlu0 %201  ;;  %v5070_v19 = vpop.permute.xlu1 %203 }
 0x19f   :  { %586 = vrot.lane.b32.xlu1 %v5062_v17, %s4853_s30  ;;  %510 = vrot.lane.b32.xlu0 %v5038_v13, %s4853_s30 }
 0x1a2   :  { %v206_v20 = vpop.permute.xlu0 %205 }
 0x1a3   :  { %738 = vrot.lane.b32.xlu1 %v5070_v19, %s4853_s30  ;;  %662 = vrot.lane.b32.xlu0 %v5064_v18, %s4853_s30 }
 0x1a4   :  { %4283 = vmatpush3.xpose.msk.msra.mxu1 %vm207_vm2, %v206_v20 }
 0x1a5   :  { %4287 = vmatprep.subr.mxu1 %v4848_v10 }
 0x1a7   :  { %4285 = vmatmul.mubr.msk.f32.vlgmr.msra.gmra.mrb[0].mxu1 %vm207_vm2, %v5028_v12 }
 0x1a8   :  { %4289 = vmatprep.mubr.msk.f32.mxu1 %vm4851_vm1, %v4848_v10 }
 0x209   :  { %v283_v21 = vpop.permute.xlu1 %282 }
 0x20a   :  { %4288 = vmatpush3.xpose.msk.msra.mxu1 %vm207_vm2, %v283_v21 }
 0x20b   :  { %4297 = vmatprep.subr.mxu1 %v4848_v10 }
 0x20d   :  { %v435_v22 = vpop.permute.xlu1 %434  ;;  %4290 = vmatmul.mubr.msk.f32.vlgmr.msra.gmra.mrb[2].mxu1 %vm207_vm2, %v5052_v15  ;;  %v359_v23 = vpop.permute.xlu0 %358 }
 0x20e   :  { %4293 = vmatpush3.xpose.msk.msra.mxu0 %vm207_vm2, %v359_v23  ;;  %4298 = vmatpush3.xpose.msk.msra.mxu1 %vm207_vm2, %v435_v22 }
 0x20f   :  { %4299 = vmatprep.mubr.msk.f32.mxu1 %vm4851_vm1, %v4848_v10  ;;  %4302 = vmatprep.subr.mxu0 %v4848_v10 }
 0x210   :  { %4307 = vmatprep.subr.mxu1 %v4848_v10 }
 0x211   :  { %v587_v24 = vpop.permute.xlu1 %586  ;;  %4295 = vmatmul.mubr.msk.f32.vlgmr.msra.gmra.mrb[2].mxu0 %vm207_vm2, %v5056_v16  ;;  %4300 = vmatmul.mubr.msk.f32.vlgmr.msra.gmra.mrb[4].mxu1 %vm207_vm2, %v5050_v14  ;;  %v511_v25 = vpop.permute.xlu0 %510 }
 0x212   :  { %4303 = vmatpush3.xpose.msk.msra.mxu0 %vm207_vm2, %v511_v25  ;;  %4308 = vmatpush3.xpose.msk.msra.mxu1 %vm207_vm2, %v587_v24 }
 0x213   :  { %4304 = vmatprep.mubr.msk.f32.mxu0 %vm4851_vm1, %v4848_v10  ;;  %4309 = vmatprep.mubr.msk.f32.mxu1 %vm4851_vm1, %v4848_v10 }
 0x214   :  { %4312 = vmatprep.subr.mxu0 %v4848_v10  ;;  %4317 = vmatprep.subr.mxu1 %v4848_v10 }
 0x215   :  { %v739_v26 = vpop.permute.xlu1 %738  ;;  %4305 = vmatmul.mubr.msk.f32.vlgmr.msra.gmra.mrb[4].mxu0 %vm207_vm2, %v5038_v13  ;;  %4310 = vmatmul.mubr.msk.f32.vlgmr.msra.gmra.mrb[6].mxu1 %vm207_vm2, %v5062_v17  ;;  %v663_v27 = vpop.permute.xlu0 %662 }
 0x216   :  { %4313 = vmatpush3.xpose.msk.msra.mxu0 %vm207_vm2, %v663_v27  ;;  %4318 = vmatpush3.xpose.msk.msra.mxu1 %vm207_vm2, %v739_v26 }
 0x217   :  { %4314 = vmatprep.mubr.msk.f32.mxu0 %vm4851_vm1, %v4848_v10  ;;  %4319 = vmatprep.mubr.msk.f32.mxu1 %vm4851_vm1, %v4848_v10 }
 0x218   :  { %4322 = vmatprep.subr.mxu0 %v4848_v10  ;;  %4327 = vmatprep.subr.mxu1 %v4848_v10 }
 0x219   :  { %4315 = vmatmul.mubr.msk.f32.vlgmr.msra.gmra.mrb[6].mxu0 %vm207_vm2, %v5064_v18  ;;  %4320 = vmatmul.mubr.msk.f32.vlgmr.msra.gmra.mrb[8].mxu1 %vm207_vm2, %v5070_v19 }
 0x21a   :  { %4324 = vmatprep.mubr.msk.f32.mxu0 %vm4851_vm1, %v4848_v10  ;;  %4329 = vmatprep.mubr.msk.f32.mxu1 %vm4851_vm1, %v4848_v10 }
 0x27a   :  { %v278_v28 = vpop.f32.mrb[0].mxu1 }
 0x27b   :  { %v4286_v29 = vpop.f32.mrb[1].mxu1  ;;  %v814_v30 = vsel %vm207_vm2, %v278_v28, -inf }
 0x27c   :  { %815 = vmax.xlane.f32.xlu0 %v814_v30 }
 0x2e0   :  { %v354_v31 = vpop.f32.mrb[2].mxu1 }
 0x2e1   :  { %v4291_v32 = vpop.f32.mrb[3].mxu1  ;;  %v817_v33 = vsel %vm207_vm2, %v354_v31, -inf }
 0x2e2   :  { %818 = vmax.xlane.f32.xlu1 %v817_v33 }
 0x2e4   :  { %v430_v34 = vpop.f32.mrb[2].mxu0  ;;  %v506_v35 = vpop.f32.mrb[4].mxu1 }
 0x2e5   :  { %v4296_v36 = vpop.f32.mrb[3].mxu0  ;;  %v4301_v37 = vpop.f32.mrb[5].mxu1  ;;  %v820_v38 = vsel %vm207_vm2, %v430_v34, -inf  ;;  %v823_v43 = vsel %vm207_vm2, %v506_v35, -inf }
 0x2e6   :  { %821 = vmax.xlane.f32.xlu0 %v820_v38 }
 0x2e8   :  { %v582_v39 = vpop.f32.mrb[4].mxu0  ;;  %v658_v40 = vpop.f32.mrb[6].mxu1 }
 0x2e9   :  { %v4306_v41 = vpop.f32.mrb[5].mxu0  ;;  %v4311_v42 = vpop.f32.mrb[7].mxu1  ;;  %v826_v44 = vsel %vm207_vm2, %v582_v39, -inf  ;;  %v829_v49 = vsel %vm207_vm2, %v658_v40, -inf }
 0x2ea   :  { %824 = vmax.xlane.f32.xlu0 %v823_v43  ;;  %827 = vmax.xlane.f32.xlu1 %v826_v44 }
 0x2ec   :  { %v734_v45 = vpop.f32.mrb[6].mxu0  ;;  %v810_v46 = vpop.f32.mrb[8].mxu1 }
 0x2ed   :  { %v4316_v47 = vpop.f32.mrb[7].mxu0  ;;  %v4321_v48 = vpop.f32.mrb[9].mxu1  ;;  %v832_v50 = vsel %vm207_vm2, %v734_v45, -inf  ;;  %v835_v51 = vsel %vm207_vm2, %v810_v46, -inf }
 0x2ee   :  { %830 = vmax.xlane.f32.xlu0 %v829_v49  ;;  %833 = vmax.xlane.f32.xlu1 %v832_v50 }
 0x2f2   :  { %836 = vmax.xlane.f32.xlu0 %v835_v51 }
 0x2ff   :  { %902 = vrot.lane.b32.xlu1 %v5028_v12, %s4854_s3 }
 0x303   :  { %1054 = vrot.lane.b32.xlu1 %v5056_v16, %s4854_s3 }
 0x307   :  { %1130 = vrot.lane.b32.xlu1 %v5050_v14, %s4854_s3 }
 0x308   :  { %978 = vrot.lane.b32.xlu0 %v5052_v15, %s4854_s3 }
 0x309   :  { %v816_v52 = vpop.xlane.xlu0 %815 }
 0x30a   :  { %v838_v53 = vsub.f32 %v278_v28, %v816_v52 }
 0x30b   :  { %1282 = vrot.lane.b32.xlu1 %v5062_v17, %s4854_s3 }
 0x30c   :  { %1206 = vrot.lane.b32.xlu0 %v5038_v13, %s4854_s3  ;;  %v846_v54 = vmul.f32 1.442695, %v838_v53 }
 0x30e   :  { %4671 = vpow2.f32 %v846_v54 }
 0x318   :  { %v5144_v55 = vpop.eup %4671 }
 0x319   :  { %v862_v56 = vsel %vm207_vm2, %v5144_v55, 0.0 }
 0x32f   :  { %863 = vadd.xlane.f32.xlu1 %v862_v56 }
 0x36f   :  { %v819_v57 = vpop.xlane.xlu1 %818 }
 0x370   :  { %v839_v58 = vsub.f32 %v354_v31, %v819_v57 }
 0x372   :  { %v848_v59 = vmul.f32 1.442695, %v839_v58 }
 0x373   :  { %v822_v60 = vpop.xlane.xlu0 %821 }
 0x374   :  { %4673 = vpow2.f32 %v848_v59  ;;  %v840_v61 = vsub.f32 %v430_v34, %v822_v60 }
 0x376   :  { %v850_v62 = vmul.f32 1.442695, %v840_v61 }
 0x377   :  { %v828_v63 = vpop.xlane.xlu1 %827  ;;  %v825_v0 = vpop.xlane.xlu0 %824 }
 0x378   :  { %4675 = vpow2.f32 %v850_v62  ;;  %v842_v1 = vsub.f32 %v582_v39, %v828_v63  ;;  %v841_v2 = vsub.f32 %v506_v35, %v825_v0 }
 0x37a   :  { %v854_v3 = vmul.f32 1.442695, %v842_v1  ;;  %v852_v4 = vmul.f32 1.442695, %v841_v2  ;;  %v1542_v1 = vld [vmem:[%s5649_s29] sm:$0xff]  ;;  %v1543_v2 = vld [vmem:[%s5649_s29 + $0x8] sm:$0xff] }
 0x37b   :  { %v834_v6 = vpop.xlane.xlu1 %833  ;;  %v831_v8 = vpop.xlane.xlu0 %830 }
 0x37c   :  { %4677 = vpow2.f32 %v854_v3  ;;  %v844_v9 = vsub.f32 %v734_v45, %v834_v6  ;;  %v843_v11 = vsub.f32 %v658_v40, %v831_v8  ;;  %v4568_v3 = vpack.c.bf16 %v1543_v2, %v1542_v1  ;;  %v1544_v8 = vld [vmem:[%s5649_s29 + $0x10] sm:$0xff]  ;;  %v4065_v2 = vld [vmem:[%s5625_s9] ss:$0 sm:$0xff] }
 0x37d   :  { %4679 = vpow2.f32 %v852_v4 }
 0x37e   :  { %v4674_v12 = vpop.eup %4673  ;;  %v858_v13 = vmul.f32 1.442695, %v844_v9  ;;  %v856_v14 = vmul.f32 1.442695, %v843_v11  ;;  %v1545_v9 = vld [vmem:[%s5649_s29 + $0x18] sm:$0xff] }
 0x37f   :  { %v903_v15 = vpop.permute.xlu1 %902  ;;  %v837_v16 = vpop.xlane.xlu0 %836  ;;  %v865_v17 = vsel %vm207_vm2, %v4674_v12, 0.0  ;;  %v4572_v11 = vpack.c.bf16 %v1545_v9, %v1544_v8 }
 0x380   :  { %4681 = vpow2.f32 %v858_v13  ;;  %v845_v20 = vsub.f32 %v810_v46, %v837_v16  ;;  %866 = vadd.xlane.f32.xlu0 %v865_v17  ;;  %4323 = vmatpush3.msra.mxu0 %v903_v15 }
 0x381   :  { %4683 = vpow2.f32 %v856_v14  ;;  %4332 = vmatprep.subr.mxu0 %v4848_v10 }
 0x382   :  { %v4676_v21 = vpop.eup %4675  ;;  %v860_v22 = vmul.f32 1.442695, %v845_v20 }
 0x383   :  { %v979_v23 = vpop.permute.xlu0 %978  ;;  %v868_v24 = vsel %vm207_vm2, %v4676_v21, 0.0  ;;  %v1055_v35 = vpop.permute.xlu1 %1054 }
 0x384   :  { %4685 = vpow2.f32 %v860_v22  ;;  %869 = vadd.xlane.f32.xlu1 %v868_v24  ;;  %4328 = vmatpush3.msra.mxu1 %v979_v23 }
 0x385   :  { %4337 = vmatprep.subr.mxu1 %v4848_v10 }
 0x386   :  { %v4678_v25 = vpop.eup %4677 }
 0x387   :  { %v4680_v26 = vpop.eup %4679  ;;  %v874_v27 = vsel %vm207_vm2, %v4678_v25, 0.0  ;;  %v1131_v36 = vpop.permute.xlu1 %1130 }
 0x388   :  { %875 = vadd.xlane.f32.xlu1 %v874_v27  ;;  %v871_v28 = vsel %vm207_vm2, %v4680_v26, 0.0 }
 0x389   :  { %872 = vadd.xlane.f32.xlu0 %v871_v28 }
 0x38a   :  { %v4682_v29 = vpop.eup %4681 }
 0x38b   :  { %v4684_v30 = vpop.eup %4683  ;;  %v880_v31 = vsel %vm207_vm2, %v4682_v29, 0.0  ;;  %v1283_v37 = vpop.permute.xlu1 %1282 }
 0x38c   :  { %881 = vadd.xlane.f32.xlu1 %v880_v31  ;;  %v877_v32 = vsel %vm207_vm2, %v4684_v30, 0.0 }
 0x38d   :  { %878 = vadd.xlane.f32.xlu0 %v877_v32 }
 0x38e   :  { %v5156_v33 = vpop.eup %4685 }
 0x38f   :  { %v883_v34 = vsel %vm207_vm2, %v5156_v33, 0.0 }
 0x391   :  { %884 = vadd.xlane.f32.xlu0 %v883_v34 }
 0x39d   :  { %1434 = vrot.lane.b32.xlu1 %v5070_v19, %s4854_s3  ;;  %v1207_v19 = vpop.permute.xlu0 %1206 }
 0x3a7   :  { %1358 = vrot.lane.b32.xlu0 %v5064_v18, %s4854_s3 }
 0x3bc   :  { %v864_v38 = vpop.xlane.xlu1 %863 }
 0x3bd   :  { %4687 = vrcp.f32 %v864_v38  ;;  %v4062_v38 = vld [vmem:[%s5620_s4] ss:$0 sm:$0xff] }
 0x3c7   :  { %v4688_v39 = vpop.eup %4687 }
 0x3c8   :  { %v894_v40 = vmul.f32 %v4688_v39, %v5144_v55 }
 0x3ca   :  { %4325 = vmatmul.mubr.msk.f32.vlgmr.msra.gmra.mrb[8].mxu0 %vm207_vm2, %v894_v40 }
 0x3cb   :  { %4333 = vmatpush3.msra.mxu0 %v1055_v35  ;;  %4334 = vmatprep.mubr.msk.f32.mxu0 %vm4851_vm1, %v4848_v10 }
 0x3cc   :  { %4342 = vmatprep.subr.mxu0 %v4848_v10 }
 0x40d   :  { %v867_v41 = vpop.xlane.xlu0 %866 }
 0x40e   :  { %4689 = vrcp.f32 %v867_v41 }
 0x411   :  { %v870_v18 = vpop.xlane.xlu1 %869 }
 0x412   :  { %4691 = vrcp.f32 %v870_v18 }
 0x415   :  { %v876_v42 = vpop.xlane.xlu1 %875 }
 0x416   :  { %4693 = vrcp.f32 %v876_v42  ;;  %v873_v43 = vpop.xlane.xlu0 %872 }
 0x417   :  { %4695 = vrcp.f32 %v873_v43 }
 0x418   :  { %v4690_v44 = vpop.eup %4689 }
 0x419   :  { %v895_v45 = vmul.f32 %v4690_v44, %v4674_v12  ;;  %v882_v46 = vpop.xlane.xlu1 %881 }
 0x41a   :  { %4697 = vrcp.f32 %v882_v46  ;;  %v879_v47 = vpop.xlane.xlu0 %878 }
 0x41b   :  { %4699 = vrcp.f32 %v879_v47  ;;  %4330 = vmatmul.mubr.msk.f32.vlgmr.msra.gmra.mrb[10].mxu1 %vm207_vm2, %v895_v45 }
 0x41c   :  { %v4692_v48 = vpop.eup %4691  ;;  %4338 = vmatpush3.msra.mxu1 %v1131_v36  ;;  %4339 = vmatprep.mubr.msk.f32.mxu1 %vm4851_vm1, %v4848_v10 }
 0x41d   :  { %v896_v49 = vmul.f32 %v4692_v48, %v4676_v21  ;;  %4347 = vmatprep.subr.mxu1 %v4848_v10  ;;  %v1435_v60 = vpop.permute.xlu1 %1434 }
 0x41e   :  { %v885_v50 = vpop.xlane.xlu0 %884 }
 0x41f   :  { %4701 = vrcp.f32 %v885_v50  ;;  %4335 = vmatmul.mubr.msk.f32.vlgmr.msra.gmra.mrb[10].mxu0 %vm207_vm2, %v896_v49 }
 0x420   :  { %v4694_v51 = vpop.eup %4693  ;;  %4343 = vmatpush3.msra.mxu0 %v1207_v19  ;;  %4344 = vmatprep.mubr.msk.f32.mxu0 %vm4851_vm1, %v4848_v10 }
 0x421   :  { %v4696_v52 = vpop.eup %4695  ;;  %v898_v53 = vmul.f32 %v4694_v51, %v4678_v25  ;;  %4352 = vmatprep.subr.mxu0 %v4848_v10 }
 0x422   :  { %v897_v54 = vmul.f32 %v4696_v52, %v4680_v26  ;;  %v1359_v55 = vpop.permute.xlu0 %1358 }
 0x423   :  { %4345 = vmatmul.mubr.msk.f32.vlgmr.msra.gmra.mrb[12].mxu0 %vm207_vm2, %v898_v53 }
 0x424   :  { %v4698_v56 = vpop.eup %4697  ;;  %4340 = vmatmul.mubr.msk.f32.vlgmr.msra.gmra.mrb[12].mxu1 %vm207_vm2, %v897_v54  ;;  %4353 = vmatpush3.msra.mxu0 %v1359_v55  ;;  %v1676_v54 = vld [vmem:[%s5621_s5 + $0x8] sm:$0xff] }
 0x425   :  { %v4700_v57 = vpop.eup %4699  ;;  %v900_v58 = vmul.f32 %v4698_v56, %v4682_v29  ;;  %4348 = vmatpush3.msra.mxu1 %v1283_v37  ;;  %4349 = vmatprep.mubr.msk.f32.mxu1 %vm4851_vm1, %v4848_v10  ;;  %v1677_v56 = vld [vmem:[%s5621_s5 + $0x10] sm:$0xff] }
 0x426   :  { %v899_v59 = vmul.f32 %v4700_v57, %v4684_v30  ;;  %4354 = vmatprep.mubr.msk.f32.mxu0 %vm4851_vm1, %v4848_v10  ;;  %4357 = vmatprep.subr.mxu1 %v4848_v10  ;;  %v1678_v57 = vld [vmem:[%s5621_s5 + $0x18] sm:$0xff] }
 0x427   :  { %4355 = vmatmul.mubr.msk.f32.vlgmr.msra.gmra.mrb[14].mxu0 %vm207_vm2, %v900_v58  ;;  %4569 = vmatprep.subr.bf16.mxu0 %v4568_v3  ;;  %v4580_v58 = vpack.c.bf16 %v1678_v57, %v1677_v56 }
 0x428   :  { %4350 = vmatmul.mubr.msk.f32.vlgmr.msra.gmra.mrb[14].mxu1 %vm207_vm2, %v899_v59  ;;  %4571 = vmatpush3.bf16.msra.mxu0 %v4568_v3 }
 0x429   :  { %v4702_v61 = vpop.eup %4701  ;;  %4358 = vmatpush3.msra.mxu1 %v1435_v60  ;;  %4359 = vmatprep.mubr.msk.f32.mxu1 %vm4851_vm1, %v4848_v10 }
 0x42a   :  { %v901_v62 = vmul.f32 %v4702_v61, %v5156_v33  ;;  %4573 = vmatprep.subr.bf16.mxu0 %v4572_v11 }
 0x42c   :  { %4360 = vmatmul.mubr.msk.f32.vlgmr.msra.gmra.mrb[16].mxu1 %vm207_vm2, %v901_v62  ;;  %4575 = vmatpush3.bf16.msra.mxu0 %v4572_v11 }
 0x49d   :  { %v974_v63 = vpop.f32.mrb[8].mxu0 }
 0x49e   :  { %v4326_v0 = vpop.f32.mrb[9].mxu0 }
 0x4ee   :  { %v1050_v4 = vpop.f32.mrb[10].mxu1 }
 0x4ef   :  { %1511 = vrot.lane.b32.xlu0 %v1050_v4, %s4855_s0  ;;  %v4331_v6 = vpop.f32.mrb[11].mxu1  ;;  %v4066_v4 = vld [vmem:[%s5626_s10] ss:$0 sm:$0xff] }
 0x4f2   :  { %v1126_v12 = vpop.f32.mrb[10].mxu0 }
 0x4f3   :  { %1515 = vrot.lane.b32.xlu1 %v1126_v12, %s4856_s13  ;;  %v4336_v13 = vpop.f32.mrb[11].mxu0 }
 0x4f6   :  { %v1278_v14 = vpop.f32.mrb[12].mxu0 }
 0x4f7   :  { %v1202_v15 = vpop.f32.mrb[12].mxu1  ;;  %v4346_v16 = vpop.f32.mrb[13].mxu0 }
 0x4f8   :  { %1519 = vrot.lane.b32.xlu1 %v1202_v15, %s5640_s27  ;;  %v4341_v17 = vpop.f32.mrb[13].mxu1  ;;  %v1784_v15 = vld [vmem:[%s5623_s7 + $0x8] sm:$0xff] }
 0x4f9   :  { %v1785_v17 = vld [vmem:[%s5623_s7 + $0x10] sm:$0xff] }
 0x4fa   :  { %v1430_v20 = vpop.f32.mrb[14].mxu0 }
 0x4fb   :  { %v1354_v21 = vpop.f32.mrb[14].mxu1  ;;  %v4356_v22 = vpop.f32.mrb[15].mxu0 }
 0x4fc   :  { %1528 = vrot.lane.b32.xlu0 %v1354_v21, %s4855_s0  ;;  %v4351_v23 = vpop.f32.mrb[15].mxu1  ;;  %v1787_v22 = vld [vmem:[%s5623_s7 + $0x20] sm:$0xff] }
 0x4fd   :  { %v1788_v23 = vld [vmem:[%s5623_s7 + $0x28] sm:$0xff] }
 0x4ff   :  { %v1506_v24 = vpop.f32.mrb[16].mxu1 }
 0x500   :  { %1536 = vrot.lane.b32.xlu1 %v1506_v24, %s5640_s27  ;;  %v4361_v25 = vpop.f32.mrb[17].mxu1  ;;  %1532 = vrot.lane.b32.xlu0 %v1430_v20, %s4856_s13  ;;  %v1786_v20 = vld [vmem:[%s5623_s7 + $0x18] sm:$0xff]  ;;  %v4592_v24 = vpack.c.bf16 %v1788_v23, %v1787_v22 }
 0x501   :  { %v4588_v21 = vpack.c.bf16 %v1786_v20, %v1785_v17  ;;  %v1789_v25 = vld [vmem:[%s5623_s7 + $0x30] sm:$0xff]  ;;  %v4073_v20 = vld [vmem:[%s5627_s11] ss:$0 sm:$0xff] }
 0x561   :  { %v1512_v27 = vpop.permute.xlu0 %1511 }
 0x562   :  { %v1522_v28 = vsel %vm207_vm2, %v974_v63, %v1512_v27 }
 0x565   :  { %v1516_v26 = vpop.permute.xlu1 %1515 }
 0x566   :  { %v1524_v29 = vsel %vm1523_vm3, %v1522_v28, %v1516_v26  ;;  %v1790_v26 = vld [vmem:[%s5623_s7 + $0x38] sm:$0xff]  ;;  %v4067_v28 = vld [vmem:[%s5622_s6] ss:$0 sm:$0xff] }
 0x567   :  { %v4596_v27 = vpack.c.bf16 %v1790_v26, %v1789_v25 }
 0x56a   :  { %v1520_v30 = vpop.permute.xlu1 %1519 }
 0x56b   :  { %v1526_v31 = vsel %vm1525_vm4, %v1524_v29, %v1520_v30 }
 0x56c   :  { %4370 = vmatprep.mubr.msk.f32.mxu0 %vm109_vm0, %v1526_v31 }
 0x56e   :  { %v1529_v32 = vpop.permute.xlu0 %1528 }
 0x56f   :  { %v1539_v33 = vsel %vm207_vm2, %v1278_v14, %v1529_v32  ;;  %v1783_v14 = vld [vmem:[%s5623_s7] sm:$0xff] }
 0x570   :  { %v4584_v16 = vpack.c.bf16 %v1784_v15, %v1783_v14 }
 0x572   :  { %v1537_v34 = vpop.permute.xlu1 %1536  ;;  %v1533_v35 = vpop.permute.xlu0 %1532  ;;  %4585 = vmatprep.subr.bf16.mxu0 %v4584_v16 }
 0x573   :  { %v1540_v36 = vsel %vm1523_vm3, %v1539_v33, %v1533_v35 }
 0x574   :  { %v1541_v37 = vsel %vm1525_vm4, %v1540_v36, %v1537_v34 }
 0x575   :  { %4371 = vmatmul.mubr.msk.f32.vlgmr.msra.gmra.mrb[16].mxu0 %vm109_vm0, %v1541_v37 }
 0x576   :  { %4587 = vmatpush3.bf16.msra.mxu0 %v4584_v16 }
 0x577   :  { %4589 = vmatprep.subr.bf16.mxu0 %v4588_v21 }
 0x57a   :  { %4591 = vmatpush3.bf16.msra.mxu0 %v4588_v21 }
 0x57b   :  { %4593 = vmatprep.subr.bf16.mxu0 %v4592_v24 }
 0x57e   :  { %4595 = vmatpush3.bf16.msra.mxu0 %v4592_v24  ;;  %v4074_v24 = vld [vmem:[%s5628_s12] ss:$0 sm:$0xff] }
 0x57f   :  { %4597 = vmatprep.subr.bf16.mxu0 %v4596_v27 }
 0x582   :  { %4599 = vmatpush3.bf16.msra.mxu0 %v4596_v27 }
 0x583   :  { %4424 = vmatprep.subr.mxu0 %v4848_v10 }
 0x648   :  { %v4372_v39 = vpop.f32.mrb[16].mxu0 }
 0x649   :  { %v1629_v40 = vadd.f32 %v4372_v39, %v4062_v38  ;;  %v1623_v19 = vpop.f32.mrb[17].mxu0 }
 0x64a   :  { %v1624_v41 = vadd.f32 %v4062_v38, %v1623_v19 }
 0x64b   :  { %v1633_v18 = vadd.f32 %v1629_v40, %v5019_v7 }
 0x64c   :  { %v1632_v42 = vadd.f32 %v1624_v41, %v5012_v5  ;;  %v1675_v5 = vld [vmem:[%s5621_s5] sm:$0xff] }
 0x64d   :  { %v1639_v43 = vsel %vm109_vm0, %v1633_v18, 0.0  ;;  %v4576_v55 = vpack.c.bf16 %v1676_v54, %v1675_v5 }
 0x64e   :  { %1640 = vadd.xlane.f32.xlu1 %v1639_v43  ;;  %v1636_v44 = vsel %vm109_vm0, %v1632_v42, 0.0 }
 0x64f   :  { %1637 = vadd.xlane.f32.xlu0 %v1636_v44  ;;  %4577 = vmatprep.subr.bf16.mxu1 %v4576_v55 }
 0x650   :  { %4579 = vmatpush3.bf16.msra.mxu1 %v4576_v55 }
 0x651   :  { %4581 = vmatprep.subr.bf16.mxu1 %v4580_v58 }
 0x654   :  { %4583 = vmatpush3.bf16.msra.mxu1 %v4580_v58 }
 0x6db   :  { %v1641_v45 = vpop.xlane.xlu1 %1640 }
 0x6dc   :  { %v1644_v46 = vmul.f32 0.03125, %v1641_v45  ;;  %v1638_v47 = vpop.xlane.xlu0 %1637 }
 0x6dd   :  { %v1643_v48 = vmul.f32 0.03125, %v1638_v47 }
 0x6de   :  { %v1646_v49 = vsub.f32 %v1633_v18, %v1644_v46 }
 0x6df   :  { %v1645_v50 = vsub.f32 %v1632_v42, %v1643_v48 }
 0x6e0   :  { %v1648_v53 = vmul.f32 %v1646_v49, %v1646_v49 }
 0x6e1   :  { %v1647_v51 = vmul.f32 %v1645_v50, %v1645_v50 }
 0x6e2   :  { %v1652_v7 = vsel %vm109_vm0, %v1648_v53, 0.0 }
 0x6e3   :  { %v1649_v52 = vsel %vm109_vm0, %v1647_v51, 0.0 }
 0x6e4   :  { %1650 = vadd.xlane.f32.xlu0 %v1649_v52 }
 0x6e8   :  { %1653 = vadd.xlane.f32.xlu0 %v1652_v7 }
 0x771   :  { %v1651_v59 = vpop.xlane.xlu0 %1650 }
 0x772   :  { %v1655_v60 = vmul.f32 0.03125, %v1651_v59 }
 0x774   :  { %v1657_v61 = vadd.f32 1e-05, %v1655_v60 }
 0x775   :  { %v1654_v62 = vpop.xlane.xlu0 %1653 }
 0x776   :  { %4703 = vrsqrt.f32 %v1657_v61  ;;  %v1656_v63 = vmul.f32 0.03125, %v1654_v62 }
 0x778   :  { %v1658_v0 = vadd.f32 1e-05, %v1656_v63 }
 0x77a   :  { %4705 = vrsqrt.f32 %v1658_v0 }
 0x780   :  { %v4704_v1 = vpop.eup %4703 }
 0x781   :  { %v1661_v3 = vmul.f32 %v4704_v1, %v1645_v50 }
 0x783   :  { %v1667_v6 = vmul.f32 %v4065_v2, %v1661_v3  ;;  %v4076_v3 = vld [vmem:[%s5646_s15 + $0x28] sm:$0xff] }
 0x784   :  { %v4706_v8 = vpop.eup %4705 }
 0x785   :  { %v1662_v9 = vmul.f32 %v4706_v8, %v1646_v49  ;;  %v1673_v11 = vadd.f32 %v4066_v4, %v1667_v6  ;;  %v4070_v49 = vld [vmem:[%s5624_s8] ss:$0 sm:$0xff]  ;;  %v4077_v6 = vld [vmem:[%s5646_s15 + $0x30] sm:$0xff]  ;;  %v4078_v8 = vld [vmem:[%s5646_s15 + $0x38] sm:$0xff] }
 0x787   :  { %v1668_v12 = vmul.f32 %v4065_v2, %v1662_v9  ;;  %4381 = vmatprep.mubr.msk.f32.mxu1 %vm109_vm0, %v1673_v11  ;;  %v4075_v2 = vld [vmem:[%s5646_s15 + $0x20] sm:$0xff]  ;;  %v4604_v9 = vpack.c.bf16 %v4078_v8, %v4077_v6 }
 0x789   :  { %v1674_v13 = vadd.f32 %v4066_v4, %v1668_v12  ;;  %v4600_v4 = vpack.c.bf16 %v4076_v3, %v4075_v2 }
 0x78b   :  { %4382 = vmatmul.mubr.msk.f32.vlgmr.msra.gmra.mrb[18].mxu1 %vm109_vm0, %v1674_v13  ;;  %4601 = vmatprep.subr.bf16.mxu1 %v4600_v4 }
 0x78c   :  { %4603 = vmatpush3.bf16.msra.mxu1 %v4600_v4 }
 0x78d   :  { %4605 = vmatprep.subr.bf16.mxu1 %v4604_v9 }
 0x790   :  { %4607 = vmatpush3.bf16.msra.mxu1 %v4604_v9 }
 0x791   :  { %4414 = vmatprep.subr.mxu1 %v4848_v10 }
 0x85e   :  { %v4383_v29 = vpop.f32.mrb[18].mxu1 }
 0x85f   :  { %v1762_v30 = vadd.f32 %v4383_v29, %v4067_v28  ;;  %v1756_v31 = vpop.f32.mrb[19].mxu1  ;;  %v4079_v29 = vld [vmem:[%s5648_s21 + $0x1] ss:$0 sm:$0xff] }
 0x860   :  { %v1757_v32 = vadd.f32 %v4067_v28, %v1756_v31 }
 0x861   :  { %v1766_v33 = vmul.f32 %v1762_v30, %v1762_v30 }
 0x862   :  { %v1765_v34 = vmul.f32 %v1757_v32, %v1757_v32 }
 0x863   :  { %v1768_v35 = vmul.f32 %v1766_v33, %v1762_v30 }
 0x864   :  { %v1767_v36 = vmul.f32 %v1765_v34, %v1757_v32 }
 0x865   :  { %v1770_v37 = vmul.f32 0.044715, %v1768_v35 }
 0x866   :  { %v1769_v38 = vmul.f32 0.044715, %v1767_v36 }
 0x867   :  { %v1772_v39 = vadd.f32 %v1770_v37, %v1762_v30 }
 0x868   :  { %v1771_v40 = vadd.f32 %v1769_v38, %v1757_v32 }
 0x869   :  { %v1774_v19 = vmul.f32 0.7978846, %v1772_v39 }
 0x86a   :  { %v1773_v41 = vmul.f32 0.7978846, %v1771_v40 }
 0x86b   :  { %4707 = vtanh.f32 %v1774_v19 }
 0x86c   :  { %4709 = vtanh.f32 %v1773_v41 }
 0x875   :  { %v4708_v18 = vpop.eup %4707 }
 0x876   :  { %v4710_v42 = vpop.eup %4709  ;;  %v1778_v43 = vadd.f32 1.0, %v4708_v18 }
 0x877   :  { %v1777_v44 = vadd.f32 1.0, %v4710_v42 }
 0x878   :  { %v1780_v45 = vmul.f32 0.5, %v1778_v43 }
 0x879   :  { %v1779_v46 = vmul.f32 0.5, %v1777_v44 }
 0x87a   :  { %v1782_v48 = vmul.f32 %v1780_v45, %v1762_v30 }
 0x87b   :  { %v1781_v47 = vmul.f32 %v1779_v46, %v1757_v32 }
 0x87d   :  { %4400 = vmatprep.mubr.msk.f32.mxu0 %vm1796_vm5, %v1781_v47 }
 0x87e   :  { %4401 = vmatmul.mubr.msk.f32.vlgmr.msra.gmra.mrb[18].mxu0 %vm1796_vm5, %v1782_v48 }
 0x87f   :  { %4426 = vmatprep.mubr.msk.f32.mxu0 %vm4851_vm1, %v4848_v10 }
 0x951   :  { %v4402_v50 = vpop.f32.mrb[18].mxu0 }
 0x952   :  { %v1875_v51 = vadd.f32 %v4402_v50, %v4070_v49  ;;  %v1869_v52 = vpop.f32.mrb[19].mxu0 }
 0x953   :  { %v1870_v53 = vadd.f32 %v4070_v49, %v1869_v52 }
 0x954   :  { %v1879_v7 = vadd.f32 %v1875_v51, %v1674_v13 }
 0x955   :  { %v1878_v5 = vadd.f32 %v1870_v53, %v1673_v11 }
 0x956   :  { %v1885_v54 = vsel %vm109_vm0, %v1879_v7, 0.0 }
 0x957   :  { %1886 = vadd.xlane.f32.xlu0 %v1885_v54  ;;  %v1882_v55 = vsel %vm109_vm0, %v1878_v5, 0.0 }
 0x958   :  { %1883 = vadd.xlane.f32.xlu1 %v1882_v55 }
 0x9e4   :  { %v1887_v56 = vpop.xlane.xlu0 %1886 }
 0x9e5   :  { %v1889_v57 = vmul.f32 0.03125, %v1887_v56  ;;  %v1884_v58 = vpop.xlane.xlu1 %1883 }
 0x9e6   :  { %v1888_v59 = vmul.f32 0.03125, %v1884_v58 }
 0x9e7   :  { %v1891_v60 = vsub.f32 %v1879_v7, %v1889_v57 }
 0x9e8   :  { %v1890_v61 = vsub.f32 %v1878_v5, %v1888_v59 }
 0x9e9   :  { %v1893_v62 = vmul.f32 %v1891_v60, %v1891_v60 }
 0x9ea   :  { %v1892_v63 = vmul.f32 %v1890_v61, %v1890_v61 }
 0x9eb   :  { %v1897_v0 = vsel %vm109_vm0, %v1893_v62, 0.0 }
 0x9ec   :  { %1898 = vadd.xlane.f32.xlu0 %v1897_v0  ;;  %v1894_v1 = vsel %vm109_vm0, %v1892_v63, 0.0 }
 0x9ed   :  { %1895 = vadd.xlane.f32.xlu1 %v1894_v1 }
 0xa79   :  { %v1899_v11 = vpop.xlane.xlu0 %1898 }
 0xa7a   :  { %v1901_v12 = vmul.f32 0.03125, %v1899_v11  ;;  %v1896_v13 = vpop.xlane.xlu1 %1895 }
 0xa7b   :  { %v1900_v14 = vmul.f32 0.03125, %v1896_v13 }
 0xa7c   :  { %v1903_v15 = vadd.f32 1e-05, %v1901_v12 }
 0xa7d   :  { %v1902_v16 = vadd.f32 1e-05, %v1900_v14 }
 0xa7e   :  { %4711 = vrsqrt.f32 %v1903_v15 }
 0xa7f   :  { %4713 = vrsqrt.f32 %v1902_v16 }
 0xa88   :  { %v4712_v17 = vpop.eup %4711 }
 0xa89   :  { %v4714_v21 = vpop.eup %4713  ;;  %v1907_v22 = vmul.f32 %v4712_v17, %v1891_v60 }
 0xa8a   :  { %v1906_v23 = vmul.f32 %v4714_v21, %v1890_v61 }
 0xa8b   :  { %v1913_v25 = vmul.f32 %v4073_v20, %v1907_v22 }
 0xa8c   :  { %v1912_v26 = vmul.f32 %v4073_v20, %v1906_v23 }
 0xa8d   :  { %v5305_v28 = vadd.f32 %v4074_v24, %v1913_v25 }
 0xa8e   :  { %v5303_v27 = vadd.f32 %v4074_v24, %v1912_v26 }
 0xa90   :  { %4411 = vmatprep.mubr.msk.f32.mxu1 %vm109_vm0, %v5303_v27 }
 0xa91   :  { %4412 = vmatmul.mubr.msk.f32.vlgmr.msra.gmra.mrb[20].mxu1 %vm109_vm0, %v5305_v28 }
 0xa92   :  { %4416 = vmatprep.mubr.msk.f32.mxu1 %vm4851_vm1, %v4848_v10 }
 0xb64   :  { %v4413_v30 = vpop.f32.mrb[20].mxu1 }
 0xb65   :  { %v2002_v31 = vpop.f32.mrb[21].mxu1  ;;  %v5322_v33 = vadd.f32 %v4413_v30, %v4079_v29 }
 0xb66   :  { %v5316_v32 = vadd.f32 %v4079_v29, %v2002_v31 }
 0xb68   :  { %2014 = vrot.lane.b32.xlu0 %v5316_v32, %s4852_s25  ;;  %2012 = vrot.lane.b32.xlu1 %v5316_v32, %s4850_s24 }
 0xb6c   :  { %2021 = vrot.lane.b32.xlu0 %v5322_v33, %s4852_s25  ;;  %2016 = vrot.lane.b32.xlu1 %v5316_v32, %s4849_s23 }
 0xb70   :  { %2025 = vrot.lane.b32.xlu0 %v5316_v32, %s4853_s30  ;;  %2019 = vrot.lane.b32.xlu1 %v5322_v33, %s4850_s24 }
 0xb74   :  { %2023 = vrot.lane.b32.xlu1 %v5322_v33, %s4849_s23 }
 0xbda   :  { %v5334_v34 = vpop.permute.xlu0 %2014  ;;  %v5336_v35 = vpop.permute.xlu1 %2012 }
 0xbdb   :  { %2177 = vrot.lane.b32.xlu0 %v5334_v34, %s4853_s30  ;;  %2101 = vrot.lane.b32.xlu1 %v5336_v35, %s4853_s30 }
 0xbde   :  { %v5342_v36 = vpop.permute.xlu0 %2021  ;;  %v5344_v37 = vpop.permute.xlu1 %2016 }
 0xbdf   :  { %2329 = vrot.lane.b32.xlu0 %v5322_v33, %s4853_s30  ;;  %2253 = vrot.lane.b32.xlu1 %v5344_v37, %s4853_s30 }
 0xbe2   :  { %v2026_v38 = vpop.permute.xlu0 %2025  ;;  %v5350_v39 = vpop.permute.xlu1 %2019 }
 0xbe3   :  { %2481 = vrot.lane.b32.xlu0 %v5342_v36, %s4853_s30  ;;  %4415 = vmatpush3.xpose.msk.msra.mxu1 %vm207_vm2, %v2026_v38 }
 0xbe4   :  { %2405 = vrot.lane.b32.xlu1 %v5350_v39, %s4853_s30  ;;  %4419 = vmatprep.subr.mxu1 %v4848_v10 }
 0xbe6   :  { %4417 = vmatmul.mubr.msk.f32.vlgmr.msra.gmra.mrb[22].mxu1 %vm207_vm2, %v5316_v32  ;;  %v5360_v40 = vpop.permute.xlu1 %2023 }
 0xbe7   :  { %4421 = vmatprep.mubr.msk.f32.mxu1 %vm4851_vm1, %v4848_v10 }
 0xbe8   :  { %2557 = vrot.lane.b32.xlu1 %v5360_v40, %s4853_s30 }
 0xc4d   :  { %v2178_v19 = vpop.permute.xlu0 %2177  ;;  %v2102_v41 = vpop.permute.xlu1 %2101 }
 0xc4e   :  { %4420 = vmatpush3.xpose.msk.msra.mxu1 %vm207_vm2, %v2102_v41  ;;  %4425 = vmatpush3.xpose.msk.msra.mxu0 %vm207_vm2, %v2178_v19 }
 0xc4f   :  { %4434 = vmatprep.subr.mxu0 %v4848_v10  ;;  %4429 = vmatprep.subr.mxu1 %v4848_v10 }
 0xc51   :  { %4427 = vmatmul.mubr.msk.f32.vlgmr.msra.gmra.mrb[20].mxu0 %vm207_vm2, %v5334_v34  ;;  %v2330_v18 = vpop.permute.xlu0 %2329  ;;  %4422 = vmatmul.mubr.msk.f32.vlgmr.msra.gmra.mrb[24].mxu1 %vm207_vm2, %v5336_v35  ;;  %v2254_v42 = vpop.permute.xlu1 %2253 }
 0xc52   :  { %4430 = vmatpush3.xpose.msk.msra.mxu1 %vm207_vm2, %v2254_v42  ;;  %4435 = vmatpush3.xpose.msk.msra.mxu0 %vm207_vm2, %v2330_v18 }
 0xc53   :  { %4431 = vmatprep.mubr.msk.f32.mxu1 %vm4851_vm1, %v4848_v10  ;;  %4436 = vmatprep.mubr.msk.f32.mxu0 %vm4851_vm1, %v4848_v10 }
 0xc54   :  { %4444 = vmatprep.subr.mxu0 %v4848_v10  ;;  %4439 = vmatprep.subr.mxu1 %v4848_v10 }
 0xc55   :  { %4437 = vmatmul.mubr.msk.f32.vlgmr.msra.gmra.mrb[22].mxu0 %vm207_vm2, %v5322_v33  ;;  %v2482_v43 = vpop.permute.xlu0 %2481  ;;  %4432 = vmatmul.mubr.msk.f32.vlgmr.msra.gmra.mrb[26].mxu1 %vm207_vm2, %v5344_v37 }
 0xc56   :  { %v2406_v44 = vpop.permute.xlu1 %2405  ;;  %4445 = vmatpush3.xpose.msk.msra.mxu0 %vm207_vm2, %v2482_v43  ;;  %4441 = vmatprep.mubr.msk.f32.mxu1 %vm4851_vm1, %v4848_v10 }
 0xc57   :  { %4440 = vmatpush3.xpose.msk.msra.mxu1 %vm207_vm2, %v2406_v44  ;;  %4446 = vmatprep.mubr.msk.f32.mxu0 %vm4851_vm1, %v4848_v10 }
 0xc58   :  { %4449 = vmatprep.subr.mxu1 %v4848_v10  ;;  %4454 = vmatprep.subr.mxu0 %v4848_v10 }
 0xc59   :  { %4447 = vmatmul.mubr.msk.f32.vlgmr.msra.gmra.mrb[24].mxu0 %vm207_vm2, %v5342_v36 }
 0xc5a   :  { %4442 = vmatmul.mubr.msk.f32.vlgmr.msra.gmra.mrb[28].mxu1 %vm207_vm2, %v5350_v39  ;;  %v2558_v45 = vpop.permute.xlu1 %2557  ;;  %4456 = vmatprep.mubr.msk.f32.mxu0 %vm4851_vm1, %v4848_v10 }
 0xc5b   :  { %4450 = vmatpush3.xpose.msk.msra.mxu1 %vm207_vm2, %v2558_v45  ;;  %4451 = vmatprep.mubr.msk.f32.mxu1 %vm4851_vm1, %v4848_v10 }
 0xc5c   :  { %4459 = vmatprep.subr.mxu1 %v4848_v10 }
 0xc5e   :  { %4452 = vmatmul.mubr.msk.f32.vlgmr.msra.gmra.mrb[30].mxu1 %vm207_vm2, %v5360_v40 }
 0xc5f   :  { %4461 = vmatprep.mubr.msk.f32.mxu1 %vm4851_vm1, %v4848_v10 }
 0xcb9   :  { %v2097_v46 = vpop.f32.mrb[22].mxu1 }
 0xcba   :  { %v4418_v47 = vpop.f32.mrb[23].mxu1  ;;  %v2633_v48 = vsel %vm207_vm2, %v2097_v46, -inf }
 0xcbb   :  { %2634 = vmax.xlane.f32.xlu0 %v2633_v48 }
 0xd24   :  { %v2173_v49 = vpop.f32.mrb[24].mxu1  ;;  %v2249_v50 = vpop.f32.mrb[20].mxu0 }
 0xd25   :  { %v4423_v51 = vpop.f32.mrb[25].mxu1  ;;  %v4428_v52 = vpop.f32.mrb[21].mxu0  ;;  %v2639_v53 = vsel %vm207_vm2, %v2249_v50, -inf  ;;  %v2636_v7 = vsel %vm207_vm2, %v2173_v49, -inf }
 0xd26   :  { %2640 = vmax.xlane.f32.xlu0 %v2639_v53  ;;  %2637 = vmax.xlane.f32.xlu1 %v2636_v7 }
 0xd28   :  { %v2325_v5 = vpop.f32.mrb[26].mxu1  ;;  %v2401_v54 = vpop.f32.mrb[22].mxu0 }
 0xd29   :  { %v4433_v55 = vpop.f32.mrb[27].mxu1  ;;  %v4438_v56 = vpop.f32.mrb[23].mxu0  ;;  %v2645_v57 = vsel %vm207_vm2, %v2401_v54, -inf  ;;  %v2642_v58 = vsel %vm207_vm2, %v2325_v5, -inf }
 0xd2a   :  { %2646 = vmax.xlane.f32.xlu1 %v2645_v57  ;;  %2643 = vmax.xlane.f32.xlu0 %v2642_v58 }
 0xd2c   :  { %v2553_v59 = vpop.f32.mrb[24].mxu0 }
 0xd2d   :  { %v2477_v60 = vpop.f32.mrb[28].mxu1  ;;  %v4448_v61 = vpop.f32.mrb[25].mxu0  ;;  %v2651_v62 = vsel %vm207_vm2, %v2553_v59, -inf }
 0xd2e   :  { %v4443_v63 = vpop.f32.mrb[29].mxu1  ;;  %2652 = vmax.xlane.f32.xlu1 %v2651_v62  ;;  %v2648_v0 = vsel %vm207_vm2, %v2477_v60, -inf }
 0xd2f   :  { %2649 = vmax.xlane.f32.xlu0 %v2648_v0 }
 0xd31   :  { %v2629_v1 = vpop.f32.mrb[30].mxu1 }
 0xd32   :  { %v4453_v2 = vpop.f32.mrb[31].mxu1  ;;  %v2654_v3 = vsel %vm207_vm2, %v2629_v1, -inf }
 0xd33   :  { %2655 = vmax.xlane.f32.xlu0 %v2654_v3 }
 0xd3f   :  { %2721 = vrot.lane.b32.xlu1 %v5316_v32, %s4854_s3 }
 0xd43   :  { %2873 = vrot.lane.b32.xlu1 %v5334_v34, %s4854_s3 }
 0xd47   :  { %2949 = vrot.lane.b32.xlu1 %v5344_v37, %s4854_s3 }
 0xd48   :  { %v2635_v4 = vpop.xlane.xlu0 %2634 }
 0xd49   :  { %2797 = vrot.lane.b32.xlu0 %v5336_v35, %s4854_s3  ;;  %v2657_v6 = vsub.f32 %v2097_v46, %v2635_v4 }
 0xd4b   :  { %3101 = vrot.lane.b32.xlu1 %v5350_v39, %s4854_s3  ;;  %v2665_v8 = vmul.f32 1.442695, %v2657_v6 }
 0xd4d   :  { %3025 = vrot.lane.b32.xlu0 %v5322_v33, %s4854_s3  ;;  %4715 = vpow2.f32 %v2665_v8 }
 0xd57   :  { %v5428_v9 = vpop.eup %4715 }
 0xd58   :  { %v2681_v11 = vsel %vm207_vm2, %v5428_v9, 0.0 }
 0xd6f   :  { %2682 = vadd.xlane.f32.xlu1 %v2681_v11 }
 0xdb3   :  { %v2641_v12 = vpop.xlane.xlu0 %2640  ;;  %v2638_v13 = vpop.xlane.xlu1 %2637 }
 0xdb4   :  { %v2659_v14 = vsub.f32 %v2249_v50, %v2641_v12  ;;  %v2658_v15 = vsub.f32 %v2173_v49, %v2638_v13 }
 0xdb6   :  { %v2669_v16 = vmul.f32 1.442695, %v2659_v14  ;;  %v2667_v17 = vmul.f32 1.442695, %v2658_v15 }
 0xdb7   :  { %v2644_v20 = vpop.xlane.xlu0 %2643  ;;  %v2647_v21 = vpop.xlane.xlu1 %2646 }
 0xdb8   :  { %4717 = vpow2.f32 %v2669_v16  ;;  %v2660_v22 = vsub.f32 %v2325_v5, %v2644_v20  ;;  %v2661_v23 = vsub.f32 %v2401_v54, %v2647_v21 }
 0xdb9   :  { %4719 = vpow2.f32 %v2667_v17 }
 0xdba   :  { %v2671_v24 = vmul.f32 1.442695, %v2660_v22  ;;  %v2673_v25 = vmul.f32 1.442695, %v2661_v23  ;;  %v4106_v22 = vld [vmem:[%s5649_s29 + $0x20] sm:$0xff]  ;;  %v4107_v23 = vld [vmem:[%s5649_s29 + $0x28] sm:$0xff] }
 0xdbb   :  { %v2653_v26 = vpop.xlane.xlu1 %2652 }
 0xdbc   :  { %4721 = vpow2.f32 %v2671_v24  ;;  %v2650_v29 = vpop.xlane.xlu0 %2649  ;;  %v2663_v30 = vsub.f32 %v2553_v59, %v2653_v26  ;;  %v4608_v24 = vpack.c.bf16 %v4107_v23, %v4106_v22  ;;  %v4109_v26 = vld [vmem:[%s5649_s29 + $0x38] sm:$0xff]  ;;  %v4113_v23 = vld [vmem:[%s5625_s9 + $0x1] ss:$0 sm:$0xff] }
 0xdbd   :  { %4723 = vpow2.f32 %v2673_v25  ;;  %v2662_v31 = vsub.f32 %v2477_v60, %v2650_v29  ;;  %v4108_v25 = vld [vmem:[%s5649_s29 + $0x30] sm:$0xff] }
 0xdbe   :  { %v2677_v32 = vmul.f32 1.442695, %v2663_v30  ;;  %v4612_v29 = vpack.c.bf16 %v4109_v26, %v4108_v25  ;;  %v4114_v25 = vld [vmem:[%s5626_s10 + $0x1] ss:$0 sm:$0xff] }
 0xdbf   :  { %v2675_v33 = vmul.f32 1.442695, %v2662_v31  ;;  %v2722_v34 = vpop.permute.xlu1 %2721 }
 0xdc0   :  { %4725 = vpow2.f32 %v2677_v32  ;;  %v2656_v35 = vpop.xlane.xlu0 %2655  ;;  %4455 = vmatpush3.msra.mxu0 %v2722_v34 }
 0xdc1   :  { %4727 = vpow2.f32 %v2675_v33  ;;  %v2664_v37 = vsub.f32 %v2629_v1, %v2656_v35  ;;  %4464 = vmatprep.subr.mxu0 %v4848_v10 }
 0xdc2   :  { %v4718_v38 = vpop.eup %4717 }
 0xdc3   :  { %v4720_v39 = vpop.eup %4719  ;;  %v2679_v19 = vmul.f32 1.442695, %v2664_v37  ;;  %v2687_v41 = vsel %vm207_vm2, %v4718_v38, 0.0  ;;  %v2874_v53 = vpop.permute.xlu1 %2873 }
 0xdc4   :  { %v2798_v18 = vpop.permute.xlu0 %2797  ;;  %2688 = vadd.xlane.f32.xlu1 %v2687_v41  ;;  %v2684_v42 = vsel %vm207_vm2, %v4720_v39, 0.0 }
 0xdc5   :  { %4729 = vpow2.f32 %v2679_v19  ;;  %4460 = vmatpush3.msra.mxu1 %v2798_v18  ;;  %2685 = vadd.xlane.f32.xlu0 %v2684_v42 }
 0xdc6   :  { %v4722_v43 = vpop.eup %4721  ;;  %4469 = vmatprep.subr.mxu1 %v4848_v10 }
 0xdc7   :  { %v4724_v44 = vpop.eup %4723  ;;  %v2690_v45 = vsel %vm207_vm2, %v4722_v43, 0.0  ;;  %v2950_v7 = vpop.permute.xlu1 %2949 }
 0xdc8   :  { %v2693_v46 = vsel %vm207_vm2, %v4724_v44, 0.0 }
 0xdc9   :  { %2691 = vadd.xlane.f32.xlu0 %v2690_v45  ;;  %2694 = vadd.xlane.f32.xlu1 %v2693_v46 }
 0xdca   :  { %v4726_v47 = vpop.eup %4725 }
 0xdcb   :  { %v4728_v48 = vpop.eup %4727  ;;  %v2699_v49 = vsel %vm207_vm2, %v4726_v47, 0.0  ;;  %v3102_v5 = vpop.permute.xlu1 %3101 }
 0xdcc   :  { %v2696_v50 = vsel %vm207_vm2, %v4728_v48, 0.0 }
 0xdcd   :  { %2697 = vadd.xlane.f32.xlu0 %v2696_v50  ;;  %2700 = vadd.xlane.f32.xlu1 %v2699_v49 }
 0xdcf   :  { %v5440_v51 = vpop.eup %4729 }
 0xdd0   :  { %v2702_v52 = vsel %vm207_vm2, %v5440_v51, 0.0 }
 0xdd1   :  { %2703 = vadd.xlane.f32.xlu0 %v2702_v52 }
 0xdde   :  { %3253 = vrot.lane.b32.xlu1 %v5360_v40, %s4854_s3  ;;  %v3026_v40 = vpop.permute.xlu0 %3025 }
 0xde7   :  { %3177 = vrot.lane.b32.xlu0 %v5342_v36, %s4854_s3 }
 0xdfc   :  { %v2683_v54 = vpop.xlane.xlu1 %2682 }
 0xdfd   :  { %4731 = vrcp.f32 %v2683_v54  ;;  %v4110_v54 = vld [vmem:[%s5620_s4 + $0x1] ss:$0 sm:$0xff] }
 0xe07   :  { %v4732_v55 = vpop.eup %4731 }
 0xe08   :  { %v2713_v56 = vmul.f32 %v4732_v55, %v5428_v9 }
 0xe0a   :  { %4457 = vmatmul.mubr.msk.f32.vlgmr.msra.gmra.mrb[26].mxu0 %vm207_vm2, %v2713_v56 }
 0xe0b   :  { %4465 = vmatpush3.msra.mxu0 %v2874_v53  ;;  %4466 = vmatprep.mubr.msk.f32.mxu0 %vm4851_vm1, %v4848_v10 }
 0xe0c   :  { %4474 = vmatprep.subr.mxu0 %v4848_v10 }
 0xe51   :  { %v2689_v57 = vpop.xlane.xlu1 %2688 }
 0xe52   :  { %v2686_v58 = vpop.xlane.xlu0 %2685  ;;  %4733 = vrcp.f32 %v2689_v57 }
 0xe53   :  { %4735 = vrcp.f32 %v2686_v58 }
 0xe56   :  { %v2692_v36 = vpop.xlane.xlu0 %2691  ;;  %v2695_v59 = vpop.xlane.xlu1 %2694 }
 0xe57   :  { %4737 = vrcp.f32 %v2692_v36 }
 0xe58   :  { %4739 = vrcp.f32 %v2695_v59 }
 0xe5a   :  { %v2698_v60 = vpop.xlane.xlu0 %2697  ;;  %v2701_v61 = vpop.xlane.xlu1 %2700 }
 0xe5b   :  { %4741 = vrcp.f32 %v2698_v60 }
 0xe5c   :  { %v4734_v62 = vpop.eup %4733  ;;  %4743 = vrcp.f32 %v2701_v61 }
 0xe5d   :  { %v4736_v63 = vpop.eup %4735  ;;  %v2715_v0 = vmul.f32 %v4734_v62, %v4718_v38 }
 0xe5e   :  { %v2714_v1 = vmul.f32 %v4736_v63, %v4720_v39  ;;  %v2704_v2 = vpop.xlane.xlu0 %2703  ;;  %v3254_v15 = vpop.permute.xlu1 %3253 }
 0xe5f   :  { %4745 = vrcp.f32 %v2704_v2  ;;  %4467 = vmatmul.mubr.msk.f32.vlgmr.msra.gmra.mrb[28].mxu0 %vm207_vm2, %v2715_v0 }
 0xe60   :  { %4462 = vmatmul.mubr.msk.f32.vlgmr.msra.gmra.mrb[32].mxu1 %vm207_vm2, %v2714_v1  ;;  %4475 = vmatpush3.msra.mxu0 %v3026_v40 }
 0xe61   :  { %v4738_v3 = vpop.eup %4737  ;;  %4470 = vmatpush3.msra.mxu1 %v2950_v7  ;;  %4471 = vmatprep.mubr.msk.f32.mxu1 %vm4851_vm1, %v4848_v10 }
 0xe62   :  { %v4740_v4 = vpop.eup %4739  ;;  %v2716_v6 = vmul.f32 %v4738_v3, %v4722_v43  ;;  %4476 = vmatprep.mubr.msk.f32.mxu0 %vm4851_vm1, %v4848_v10  ;;  %4479 = vmatprep.subr.mxu1 %v4848_v10  ;;  %v3178_v9 = vpop.permute.xlu0 %3177 }
 0xe63   :  { %v2717_v8 = vmul.f32 %v4740_v4, %v4724_v44  ;;  %4484 = vmatprep.subr.mxu0 %v4848_v10 }
 0xe64   :  { %4472 = vmatmul.mubr.msk.f32.vlgmr.msra.gmra.mrb[34].mxu1 %vm207_vm2, %v2716_v6 }
 0xe65   :  { %v4742_v11 = vpop.eup %4741  ;;  %4477 = vmatmul.mubr.msk.f32.vlgmr.msra.gmra.mrb[30].mxu0 %vm207_vm2, %v2717_v8  ;;  %4480 = vmatpush3.msra.mxu1 %v3102_v5  ;;  %v4116_v8 = vld [vmem:[%s5621_s5 + $0x28] sm:$0xff] }
 0xe66   :  { %v4744_v12 = vpop.eup %4743  ;;  %v2718_v13 = vmul.f32 %v4742_v11, %v4728_v48  ;;  %4485 = vmatpush3.msra.mxu0 %v3178_v9  ;;  %4481 = vmatprep.mubr.msk.f32.mxu1 %vm4851_vm1, %v4848_v10  ;;  %v4117_v11 = vld [vmem:[%s5621_s5 + $0x30] sm:$0xff] }
 0xe67   :  { %v2719_v14 = vmul.f32 %v4744_v12, %v4726_v47  ;;  %4486 = vmatprep.mubr.msk.f32.mxu0 %vm4851_vm1, %v4848_v10  ;;  %4489 = vmatprep.subr.mxu1 %v4848_v10  ;;  %v4118_v12 = vld [vmem:[%s5621_s5 + $0x38] sm:$0xff] }
 0xe68   :  { %4482 = vmatmul.mubr.msk.f32.vlgmr.msra.gmra.mrb[36].mxu1 %vm207_vm2, %v2718_v13  ;;  %4609 = vmatprep.subr.bf16.mxu0 %v4608_v24  ;;  %v4620_v13 = vpack.c.bf16 %v4118_v12, %v4117_v11 }
 0xe69   :  { %v4746_v16 = vpop.eup %4745  ;;  %4487 = vmatmul.mubr.msk.f32.vlgmr.msra.gmra.mrb[32].mxu0 %vm207_vm2, %v2719_v14  ;;  %4490 = vmatpush3.msra.mxu1 %v3254_v15 }
 0xe6a   :  { %v2720_v17 = vmul.f32 %v4746_v16, %v5440_v51  ;;  %4491 = vmatprep.mubr.msk.f32.mxu1 %vm4851_vm1, %v4848_v10  ;;  %4611 = vmatpush3.bf16.msra.mxu0 %v4608_v24 }
 0xe6b   :  { %4613 = vmatprep.subr.bf16.mxu0 %v4612_v29 }
 0xe6c   :  { %4492 = vmatmul.mubr.msk.f32.vlgmr.msra.gmra.mrb[38].mxu1 %vm207_vm2, %v2720_v17 }
 0xe6e   :  { %4615 = vmatpush3.bf16.msra.mxu0 %v4612_v29 }
 0xedd   :  { %v2793_v20 = vpop.f32.mrb[26].mxu0 }
 0xede   :  { %v4458_v21 = vpop.f32.mrb[27].mxu0 }
 0xf32   :  { %v2945_v30 = vpop.f32.mrb[28].mxu0 }
 0xf33   :  { %v2869_v31 = vpop.f32.mrb[32].mxu1  ;;  %3334 = vrot.lane.b32.xlu1 %v2945_v30, %s4856_s13  ;;  %v4468_v32 = vpop.f32.mrb[29].mxu0 }
 0xf34   :  { %3330 = vrot.lane.b32.xlu0 %v2869_v31, %s4855_s0  ;;  %v4463_v33 = vpop.f32.mrb[33].mxu1 }
 0xf37   :  { %v3021_v34 = vpop.f32.mrb[34].mxu1 }
 0xf38   :  { %v3097_v35 = vpop.f32.mrb[30].mxu0  ;;  %v4473_v37 = vpop.f32.mrb[35].mxu1  ;;  %3338 = vrot.lane.b32.xlu1 %v3021_v34, %s5650_s17  ;;  %v4122_v34 = vld [vmem:[%s5623_s7 + $0x40] sm:$0xff] }
 0xf39   :  { %v4478_v38 = vpop.f32.mrb[31].mxu0 }
 0xf3a   :  { %v4124_v38 = vld [vmem:[%s5623_s7 + $0x50] sm:$0xff] }
 0xf3b   :  { %v3173_v39 = vpop.f32.mrb[36].mxu1 }
 0xf3c   :  { %v3249_v19 = vpop.f32.mrb[32].mxu0  ;;  %3345 = vrot.lane.b32.xlu0 %v3173_v39, %s4855_s0  ;;  %v4483_v41 = vpop.f32.mrb[37].mxu1  ;;  %v4125_v39 = vld [vmem:[%s5623_s7 + $0x58] sm:$0xff] }
 0xf3d   :  { %v4488_v18 = vpop.f32.mrb[33].mxu0  ;;  %v4126_v41 = vld [vmem:[%s5623_s7 + $0x60] sm:$0xff] }
 0xf3e   :  { %v4127_v18 = vld [vmem:[%s5623_s7 + $0x68] sm:$0xff] }
 0xf3f   :  { %v3325_v42 = vpop.f32.mrb[38].mxu1 }
 0xf40   :  { %3349 = vrot.lane.b32.xlu0 %v3249_v19, %s4856_s13  ;;  %3353 = vrot.lane.b32.xlu1 %v3325_v42, %s5650_s17  ;;  %v4493_v43 = vpop.f32.mrb[39].mxu1  ;;  %v4628_v19 = vpack.c.bf16 %v4125_v39, %v4124_v38  ;;  %v4632_v42 = vpack.c.bf16 %v4127_v18, %v4126_v41  ;;  %v4134_v38 = vld [vmem:[%s5628_s12 + $0x1] ss:$0 sm:$0xff] }
 0xf41   :  { %v4128_v43 = vld [vmem:[%s5623_s7 + $0x70] sm:$0xff] }
 0xfa5   :  { %v3335_v44 = vpop.permute.xlu1 %3334 }
 0xfa6   :  { %v3331_v45 = vpop.permute.xlu0 %3330 }
 0xfa7   :  { %v3341_v46 = vsel %vm207_vm2, %v2793_v20, %v3331_v45 }
 0xfa8   :  { %v3342_v47 = vsel %vm1523_vm3, %v3341_v46, %v3335_v44  ;;  %v4129_v44 = vld [vmem:[%s5623_s7 + $0x78] sm:$0xff]  ;;  %v4119_v46 = vld [vmem:[%s5622_s6 + $0x1] ss:$0 sm:$0xff] }
 0xfa9   :  { %v4636_v45 = vpack.c.bf16 %v4129_v44, %v4128_v43  ;;  %v3813_v43 = vld [vmem:[%s5630_s14 + $0x8] sm:$0xff] }
 0xfaa   :  { %v3339_v48 = vpop.permute.xlu1 %3338 }
 0xfab   :  { %v3343_v49 = vsel %vm1525_vm4, %v3342_v47, %v3339_v48 }
 0xfac   :  { %4502 = vmatprep.mubr.msk.f32.mxu0 %vm109_vm0, %v3343_v49 }
 0xfae   :  { %v3346_v50 = vpop.permute.xlu0 %3345 }
 0xfaf   :  { %v3356_v51 = vsel %vm207_vm2, %v3097_v35, %v3346_v50  ;;  %v4123_v35 = vld [vmem:[%s5623_s7 + $0x48] sm:$0xff] }
 0xfb0   :  { %v4624_v37 = vpack.c.bf16 %v4123_v35, %v4122_v34 }
 0xfb2   :  { %v3350_v52 = vpop.permute.xlu0 %3349  ;;  %v3354_v53 = vpop.permute.xlu1 %3353  ;;  %4625 = vmatprep.subr.bf16.mxu0 %v4624_v37 }
 0xfb3   :  { %v3357_v7 = vsel %vm1523_vm3, %v3356_v51, %v3350_v52 }
 0xfb4   :  { %v3358_v5 = vsel %vm1525_vm4, %v3357_v7, %v3354_v53 }
 0xfb5   :  { %4503 = vmatmul.mubr.msk.f32.vlgmr.msra.gmra.mrb[34].mxu0 %vm109_vm0, %v3358_v5 }
 0xfb6   :  { %4627 = vmatpush3.bf16.msra.mxu0 %v4624_v37 }
 0xfb7   :  { %4629 = vmatprep.subr.bf16.mxu0 %v4628_v19 }
 0xfba   :  { %4631 = vmatpush3.bf16.msra.mxu0 %v4628_v19 }
 0xfbb   :  { %4633 = vmatprep.subr.bf16.mxu0 %v4632_v42 }
 0xfbe   :  { %4635 = vmatpush3.bf16.msra.mxu0 %v4632_v42  ;;  %v3812_v42 = vld [vmem:[%s5630_s14] sm:$0xff] }
 0xfbf   :  { %4637 = vmatprep.subr.bf16.mxu0 %v4636_v45 }
 0xfc2   :  { %4639 = vmatpush3.bf16.msra.mxu0 %v4636_v45  ;;  %v3738_v45 = vld [vmem:[#allocation2] sm:$0x3] }
0x1088   :  { %v4504_v55 = vpop.f32.mrb[34].mxu0 }
0x1089   :  { %v3447_v56 = vadd.f32 %v4504_v55, %v4110_v54  ;;  %v3441_v40 = vpop.f32.mrb[35].mxu0 }
0x108a   :  { %v3442_v57 = vadd.f32 %v4110_v54, %v3441_v40 }
0x108b   :  { %v3451_v58 = vadd.f32 %v3447_v56, %v5305_v28 }
0x108c   :  { %v3450_v36 = vadd.f32 %v3442_v57, %v5303_v27  ;;  %v4115_v27 = vld [vmem:[%s5621_s5 + $0x20] sm:$0xff] }
0x108d   :  { %v3457_v59 = vsel %vm109_vm0, %v3451_v58, 0.0  ;;  %v4616_v9 = vpack.c.bf16 %v4116_v8, %v4115_v27 }
0x108e   :  { %3458 = vadd.xlane.f32.xlu1 %v3457_v59  ;;  %v3454_v60 = vsel %vm109_vm0, %v3450_v36, 0.0 }
0x108f   :  { %3455 = vadd.xlane.f32.xlu0 %v3454_v60  ;;  %4617 = vmatprep.subr.bf16.mxu1 %v4616_v9 }
0x1090   :  { %4619 = vmatpush3.bf16.msra.mxu1 %v4616_v9 }
0x1091   :  { %4621 = vmatprep.subr.bf16.mxu1 %v4620_v13 }
0x1094   :  { %4623 = vmatpush3.bf16.msra.mxu1 %v4620_v13 }
0x111b   :  { %v3459_v61 = vpop.xlane.xlu1 %3458 }
0x111c   :  { %v3461_v62 = vmul.f32 0.03125, %v3459_v61  ;;  %v3456_v63 = vpop.xlane.xlu0 %3455 }
0x111d   :  { %v3460_v0 = vmul.f32 0.03125, %v3456_v63 }
0x111e   :  { %v3463_v1 = vsub.f32 %v3451_v58, %v3461_v62 }
0x111f   :  { %v3462_v2 = vsub.f32 %v3450_v36, %v3460_v0 }
0x1120   :  { %v3465_v6 = vmul.f32 %v3463_v1, %v3463_v1 }
0x1121   :  { %v3464_v3 = vmul.f32 %v3462_v2, %v3462_v2 }
0x1122   :  { %v3469_v28 = vsel %vm109_vm0, %v3465_v6, 0.0 }
0x1123   :  { %v3466_v4 = vsel %vm109_vm0, %v3464_v3, 0.0 }
0x1124   :  { %3467 = vadd.xlane.f32.xlu0 %v3466_v4 }
0x1128   :  { %3470 = vadd.xlane.f32.xlu0 %v3469_v28 }
0x11b1   :  { %v3468_v14 = vpop.xlane.xlu0 %3467 }
0x11b2   :  { %v3472_v15 = vmul.f32 0.03125, %v3468_v14 }
0x11b4   :  { %v3474_v16 = vadd.f32 1e-05, %v3472_v15 }
0x11b5   :  { %v3471_v17 = vpop.xlane.xlu0 %3470 }
0x11b6   :  { %4747 = vrsqrt.f32 %v3474_v16  ;;  %v3473_v20 = vmul.f32 0.03125, %v3471_v17 }
0x11b8   :  { %v3475_v21 = vadd.f32 1e-05, %v3473_v20 }
0x11ba   :  { %4749 = vrsqrt.f32 %v3475_v21 }
0x11c0   :  { %v4748_v22 = vpop.eup %4747 }
0x11c1   :  { %v3478_v24 = vmul.f32 %v4748_v22, %v3462_v2 }
0x11c3   :  { %v3484_v26 = vmul.f32 %v4113_v23, %v3478_v24 }
0x11c4   :  { %v4750_v29 = vpop.eup %4749 }
0x11c5   :  { %v3479_v30 = vmul.f32 %v4750_v29, %v3463_v1  ;;  %v3490_v31 = vadd.f32 %v4114_v25, %v3484_v26  ;;  %v4130_v1 = vld [vmem:[%s5624_s8 + $0x1] ss:$0 sm:$0xff] }
0x11c7   :  { %v3485_v32 = vmul.f32 %v4113_v23, %v3479_v30  ;;  %4513 = vmatprep.mubr.msk.f32.mxu1 %vm109_vm0, %v3490_v31  ;;  %v4858_v23 = vmov 0.0|0.0  }
0x11c8   :  { %4640 = vmatprep.subr.bf16.mxu1 %v4858_v23 }
0x11c9   :  { %v3491_v33 = vadd.f32 %v4114_v25, %v3485_v32 }
0x11cb   :  { %4514 = vmatmul.mubr.msk.f32.vlgmr.msra.gmra.mrb[40].mxu1 %vm109_vm0, %v3491_v33 }
0x11cc   :  { %4539 = vmatprep.mubr.msk.f32.mxu1 %vm4851_vm1, %v4848_v10 }
0x129e   :  { %v4515_v47 = vpop.f32.mrb[40].mxu1 }
0x129f   :  { %v3580_v48 = vadd.f32 %v4515_v47, %v4119_v46  ;;  %v3574_v49 = vpop.f32.mrb[41].mxu1  ;;  %v3814_v47 = vld [vmem:[%s5630_s14 + $0x10] sm:$0xff] }
0x12a0   :  { %v3575_v50 = vadd.f32 %v4119_v46, %v3574_v49  ;;  %v4644_v46 = vpack.c.bf16 %v3813_v43, %v3812_v42 }
0x12a1   :  { %v3584_v51 = vmul.f32 %v3580_v48, %v3580_v48 }
0x12a2   :  { %v3583_v52 = vmul.f32 %v3575_v50, %v3575_v50 }
0x12a3   :  { %v3586_v53 = vmul.f32 %v3584_v51, %v3580_v48 }
0x12a4   :  { %v3585_v7 = vmul.f32 %v3583_v52, %v3575_v50  ;;  %v3897_v52 = vld [vmem:[%s5632_s16] sm:$0xff] }
0x12a5   :  { %v3588_v5 = vmul.f32 0.044715, %v3586_v53  ;;  %v3898_v53 = vld [vmem:[%s5632_s16 + $0x8] sm:$0xff] }
0x12a6   :  { %v3587_v54 = vmul.f32 0.044715, %v3585_v7  ;;  %v4650_v7 = vpack.c.bf16 %v3898_v53, %v3897_v52 }
0x12a7   :  { %v3590_v55 = vadd.f32 %v3588_v5, %v3580_v48  ;;  %v3994_v5 = vld [vmem:[%s5634_s18] sm:$0x3] }
0x12a8   :  { %v3589_v56 = vadd.f32 %v3587_v54, %v3575_v50  ;;  %v4859_v54 = vmov 0  }
0x12a9   :  { %v3592_v40 = vmul.f32 0.7978846, %v3590_v55  ;;  %4670 = vset.pattern.permute.xlu0 %v4859_v54  ;;  %v4136_v55 = vld [vmem:[#allocation5] ss:$0 sm:$0xff] }
0x12aa   :  { %v3591_v57 = vmul.f32 0.7978846, %v3589_v56 }
0x12ab   :  { %4751 = vtanh.f32 %v3592_v40 }
0x12ac   :  { %4753 = vtanh.f32 %v3591_v57 }
0x12b5   :  { %v4752_v58 = vpop.eup %4751 }
0x12b6   :  { %v4754_v36 = vpop.eup %4753  ;;  %v3596_v59 = vadd.f32 1.0, %v4752_v58  ;;  %v4138_v58 = vld [vmem:[#allocation7] ss:$0 sm:$0xff] }
0x12b7   :  { %v3595_v60 = vadd.f32 1.0, %v4754_v36 }
0x12b8   :  { %v3598_v61 = vmul.f32 0.5, %v3596_v59 }
0x12b9   :  { %v3597_v62 = vmul.f32 0.5, %v3595_v60 }
0x12ba   :  { %v3600_v0 = vmul.f32 %v3598_v61, %v3580_v48  ;;  %v3815_v48 = vld [vmem:[%s5630_s14 + $0x18] sm:$0xff] }
0x12bb   :  { %v3599_v63 = vmul.f32 %v3597_v62, %v3575_v50  ;;  %v4647_v49 = vpack.c.bf16 %v3815_v48, %v3814_v47 }
0x12bd   :  { %4532 = vmatprep.mubr.msk.f32.mxu0 %vm1796_vm5, %v3599_v63 }
0x12be   :  { %4533 = vmatmul.mubr.msk.f32.vlgmr.msra.gmra.mrb[36].mxu0 %vm1796_vm5, %v3600_v0 }
0x1391   :  { %v4534_v2 = vpop.f32.mrb[36].mxu0 }
0x1392   :  { %v3693_v3 = vadd.f32 %v4534_v2, %v4130_v1  ;;  %v3687_v4 = vpop.f32.mrb[37].mxu0 }
0x1393   :  { %v3688_v6 = vadd.f32 %v4130_v1, %v3687_v4  ;;  %v3992_v1 = vlaneseq }
0x1394   :  { %v3697_v28 = vadd.f32 %v3693_v3, %v3491_v33  ;;  %v4133_v33 = vld [vmem:[%s5627_s11 + $0x1] ss:$0 sm:$0xff] }
0x1395   :  { %v3696_v27 = vadd.f32 %v3688_v6, %v3490_v31  ;;  %v3993_v2 = vand.u32 127, %v3992_v1 }
0x1396   :  { %v3703_v8 = vsel %vm109_vm0, %v3697_v28, 0.0 }
0x1397   :  { %3704 = vadd.xlane.f32.xlu0 %v3703_v8  ;;  %v3700_v9 = vsel %vm109_vm0, %v3696_v27, 0.0 }
0x1398   :  { %3701 = vadd.xlane.f32.xlu1 %v3700_v9 }
0x1424   :  { %v3705_v11 = vpop.xlane.xlu0 %3704 }
0x1425   :  { %v3707_v12 = vmul.f32 0.03125, %v3705_v11  ;;  %v3702_v13 = vpop.xlane.xlu1 %3701 }
0x1426   :  { %v3706_v14 = vmul.f32 0.03125, %v3702_v13 }
0x1427   :  { %v3709_v15 = vsub.f32 %v3697_v28, %v3707_v12 }
0x1428   :  { %v3708_v16 = vsub.f32 %v3696_v27, %v3706_v14 }
0x1429   :  { %v3711_v17 = vmul.f32 %v3709_v15, %v3709_v15 }
0x142a   :  { %v3710_v20 = vmul.f32 %v3708_v16, %v3708_v16 }
0x142b   :  { %v3715_v21 = vsel %vm109_vm0, %v3711_v17, 0.0 }
0x142c   :  { %3716 = vadd.xlane.f32.xlu0 %v3715_v21  ;;  %v3712_v22 = vsel %vm109_vm0, %v3710_v20, 0.0 }
0x142d   :  { %3713 = vadd.xlane.f32.xlu1 %v3712_v22 }
0x1442   :  { %3996 = vperm.xlu0 %4670, %v3994_v5  }
0x14b9   :  { %v3717_v24 = vpop.xlane.xlu0 %3716 }
0x14ba   :  { %v3719_v25 = vmul.f32 0.03125, %v3717_v24  ;;  %v3714_v26 = vpop.xlane.xlu1 %3713 }
0x14bb   :  { %v3718_v29 = vmul.f32 0.03125, %v3714_v26 }
0x14bc   :  { %v3721_v30 = vadd.f32 1e-05, %v3719_v25 }
0x14bd   :  { %v3720_v31 = vadd.f32 1e-05, %v3718_v29 }
0x14be   :  { %4755 = vrsqrt.f32 %v3721_v30 }
0x14bf   :  { %4757 = vrsqrt.f32 %v3720_v31 }
0x14c1   :  { %v3997_v3 = vpop.permute.xlu0 %3996 }
0x14c2   :  { %vm3998_vm7 = vcmp.eq.s32.totalorder %v3993_v2, %v3997_v3 }
0x14c8   :  { %v4756_v32 = vpop.eup %4755 }
0x14c9   :  { %v4758_v34 = vpop.eup %4757  ;;  %v3725_v35 = vmul.f32 %v4756_v32, %v3709_v15 }
0x14ca   :  { %v3724_v37 = vmul.f32 %v4758_v34, %v3708_v16 }
0x14cb   :  { %v3731_v39 = vmul.f32 %v4133_v33, %v3725_v35 }
0x14cc   :  { %v3730_v19 = vmul.f32 %v4133_v33, %v3724_v37 }
0x14cd   :  { %v3737_v41 = vadd.f32 %v4134_v38, %v3731_v39 }
0x14ce   :  { %v3736_v18 = vadd.f32 %v4134_v38, %v3730_v19 }
0x14d0   :  { %v4641_v44 = vpack.c.bf16 %v3737_v41, %v3736_v18 }
0x14d2   :  { %4642 = vmatpush3.bf16.msra.mxu1 %v4641_v44 }
0x14d3   :  { %4643 = vmatprep.subr.bf16.mxu1 %v4858_v23 }
0x14d5   :  { %4540 = vmatmul.mubr.msk.f32.vlgmr.msra.gmra.mrb[42].mxu1 %vm1523_vm3, %v3738_v45 }
0x14d6   :  { %4645 = vmatpush3.bf16.msra.mxu1 %v4644_v46  ;;  %4550 = vmatprep.mubr.msk.f32.mxu1 %vm4851_vm1, %v4848_v10 }
0x14d7   :  { %4646 = vmatprep.subr.bf16.mxu1 %v4858_v23 }
0x14da   :  { %4648 = vmatpush3.bf16.msra.mxu1 %v4647_v49 }
0x14db   :  { %4649 = vmatprep.subr.bf16.mxu1 %v4858_v23 }
0x15a8   :  { %v3808_v50 = vpop.f32.mrb[42].mxu1 }
0x15a9   :  { %v4541_v51 = vpop.f32.mrb[43].mxu1  ;;  %4551 = vmatmul.mubr.msk.f32.vlgmr.msra.gmra.mrb[44].mxu1 %vm109_vm0, %v3808_v50 }
0x15aa   :  { %4557 = vmatprep.mubr.msk.f32.mxu1 %vm4851_vm1, %v4848_v10  ;;  %4651 = vmatpush3.bf16.msra.mxu1 %v4650_v7 }
0x167c   :  { %v3892_v56 = vpop.f32.mrb[44].mxu1 }
0x167d   :  { %v3893_v10 = vadd.f32 %v4136_v55, %v3892_v56  ;;  %v4552_v40 = vpop.f32.mrb[45].mxu1 }
0x167f   :  { %v3896_v57 = vmax.f32 %v3893_v10, 0.0 }
0x1681   :  { %4558 = vmatmul.mubr.msk.f32.vlgmr.msra.gmra.mrb[46].mxu1 %vm1523_vm3, %v3896_v57 }
0x1754   :  { %v3975_v36 = vpop.f32.mrb[46].mxu1 }
0x1755   :  { %v3976_v59 = vadd.f32 %v4138_v58, %v3975_v36  ;;  %v4559_v60 = vpop.f32.mrb[47].mxu1 }
0x1757   :  { %v3980_v61 = vsel %vm3979_vm6, %v3976_v59, -inf  ;;  %v3999_v28 = vsel %vm3998_vm7, %v3976_v59, 0.0 }
0x1758   :  { %3981 = vmax.xlane.f32.xlu1 %v3980_v61  ;;  %v4000_v27 = vsel %vm3979_vm6, %v3999_v28, 0.0 }
0x17e5   :  { %v3982_v62 = vpop.xlane.xlu1 %3981 }
0x17e6   :  { %v3983_v63 = vsub.f32 %v3976_v59, %v3982_v62 }
0x17e8   :  { %v3984_v0 = vmul.f32 1.442695, %v3983_v63 }
0x17ea   :  { %4759 = vpow2.f32 %v3984_v0 }
0x17f4   :  { %v4760_v4 = vpop.eup %4759 }
0x17f5   :  { %v3986_v6 = vsel %vm3979_vm6, %v4760_v4, 0.0 }
0x17f6   :  { %3987 = vadd.xlane.f32.xlu1 %v3986_v6 }
0x17fa   :  { %4001 = vadd.xlane.f32.xlu1 %v4000_v27 }
0x1883   :  { %v3988_v8 = vpop.xlane.xlu1 %3987 }
0x1884   :  { %4761 = vlog2.f32 %v3988_v8 }
0x1887   :  { %v4002_v13 = vpop.xlane.xlu1 %4001 }
0x188e   :  { %v4762_v9 = vpop.eup %4761 }
0x188f   :  { %v3990_v11 = vmul.f32 0.6931472, %v4762_v9 }
0x1891   :  { %v3991_v12 = vadd.f32 %v3990_v11, %v3982_v62 }
0x1893   :  { %v4003_v14 = vsub.f32 %v3991_v12, %v4002_v13 }
0x1895   :  { %v4005_v15 = vsel %vm4004_vm8, %v4003_v14, 0.0 }
0x1896   :  { %4006 = vadd.xlane.f32.xlu1 %v4005_v15 }
0x1923   :  { %v4007_v16 = vpop.xlane.xlu1 %4006 }
0x1924   :  { %v4008_v17 = vrot.slane %v4007_v16, 4 }
0x1926   :  { %v4009_v20 = vadd.f32 %v4008_v17, %v4007_v16 }
0x1928   :  { %v4010_v21 = vrot.slane %v4009_v20, 2 }
0x192a   :  { %v4011_v22 = vadd.f32 %v4010_v21, %v4009_v20 }
0x192c   :  { %v4012_v23 = vrot.slane %v4011_v22, 1 }
0x192e   :  { %v4013_v24 = vadd.f32 %v4012_v23, %v4011_v22 }
0x1930   :  { %4652 = vpush %v4013_v24 }
0x1961   :  { %s4653_s16 = spop %4652 }
0x1962   :  { %s4017_s18 = smul.f32 0.5, %s4653_s16 }
0x1964   :  { %4019 = sst [smem:[#allocation8]] %s4017_s18 }
0x1965   :  { %4838 = shalt.err (!%p4835_p12)
}
0x1966   :  { %s4860_s22 = smov [#allocation8]  }
0x1967   :  { %4027 = dma.smem_to_hbm %s4860_s22, 16, %s5635_s19, [#allocation4]  }
0x1968   :  { %4843 = dma.done.wait [#allocation4], 16  }
0x1969   :  { %4844 = vsyncadd [#allocation4], 4294967280 }
0x196a   :  { %4031 = sfence }
0x196b   :  { %4032 = vsyncpa [#allocation3], 1 }
0x196c   :  { %4033 = vsyncpa [#allocation6], 1 }
0x196d   :  { %4034 = vsyncpa [#allocation4], 1 }

</bundles_post_ra>
